<compile_context>
chip_gen: v7x
topology: tpu7x:2x2x1
jax: 0.10.0
libtpu: 0.0.40
codegen_flags: <defaults>
</compile_context>

<pallas_src>
import functools

import jax
import jax.numpy as jnp
from jax.experimental import pallas as pl
from jax.experimental.pallas import tpu as pltpu

LN_EPS = 1e-5  # PyTorch nn.LayerNorm default
NEG_INF = -1e30


def _round_up(a, b):
    return (a + b - 1) // b * b


def _layer_norm(z, gamma, beta):
    mu = jnp.mean(z, axis=-1, keepdims=True)
    var = jnp.mean(jnp.square(z - mu), axis=-1, keepdims=True)
    return (z - mu) * jax.lax.rsqrt(var + LN_EPS) * gamma + beta


def head_loss_kernel(x_ref, xres_ref, labels_ref,
                     w1_ref, b1_ref, w2_ref, b2_ref,
                     g_ffn_ref, be_ffn_ref, g_ref, be_ref,
                     wp_ref, bp_ref, cw_ref,
                     logits_ref, partial_ref, *, n_classes):
    # Activations arrive as bf16 tiles (halves input HBM traffic); keep the
    # raw bf16 around as the MXU operand and upcast once for elementwise math.
    xr_bf = xres_ref[...]                     # (TM, D) bf16
    x = x_ref[...].astype(jnp.float32)        # (TM, D) dec_outputs tile
    xr = xr_bf.astype(jnp.float32)            # (TM, D) dec_outputs_res tile

    # PoswiseFeedForwardNet: LayerNorm(Linear2(ReLU(Linear1(xr))) + xr)
    # bf16 MXU operands, f32 accumulation; elementwise math stays f32.
    h = jnp.dot(xr_bf, w1_ref[...], preferred_element_type=jnp.float32) + b1_ref[...]
    h = jnp.maximum(h, 0.0)
    ffn = jnp.dot(h.astype(jnp.bfloat16), w2_ref[...],
                  preferred_element_type=jnp.float32) + b2_ref[...]
    ffn = _layer_norm(ffn + xr, g_ffn_ref[...], be_ffn_ref[...])

    # Classifier: final_projection(self.norm(dec_outputs + pos_ffn(dec_outputs_res)))
    y = _layer_norm(x + ffn, g_ref[...], be_ref[...])
    logits = jnp.dot(y.astype(jnp.bfloat16), wp_ref[...],
                     preferred_element_type=jnp.float32) + bp_ref[...]
    # bf16 writeback of the lane-dense slab; the loss below uses f32 `logits`.
    logits_ref[...] = logits.astype(logits_ref.dtype)

    # Fused weighted cross-entropy partial sums over this row tile.
    tm, cp = logits.shape
    col = jax.lax.broadcasted_iota(jnp.int32, (tm, cp), 1)
    valid_col = col < n_classes
    masked = jnp.where(valid_col, logits, NEG_INF)
    m = jnp.max(masked, axis=-1, keepdims=True)
    lse = m + jnp.log(jnp.sum(jnp.exp(masked - m), axis=-1, keepdims=True))
    onehot = col == labels_ref[...]                                  # (TM, CP)
    xy = jnp.sum(jnp.where(onehot, logits, 0.0), axis=-1, keepdims=True)
    w = jnp.sum(jnp.where(onehot, cw_ref[...], 0.0), axis=-1, keepdims=True)
    nll = lse - xy                                                   # (TM, 1)

    num = jnp.sum(w * nll)   # padded rows have w == 0 -> no contribution
    den = jnp.sum(w)
    pc = jax.lax.broadcasted_iota(jnp.int32, (8, 128), 1)
    partial_ref[...] = jnp.where(pc == 0, num, jnp.where(pc == 1, den, 0.0))


def _pick_tile(N, D, d_ff, CP, vmem_budget=28 * 2**20):
    """Row-tile selection: minimize padded rows, prefer >= 2 grid tiles
    (v7x megacore), then larger tiles; reject tiles exceeding the VMEM budget
    (conservative vs. v7x's 32 MiB scoped default)."""
    N128 = _round_up(max(N, 1), 128)
    best = None
    for c in (512, 384, 256, 128):
        est = (2 * 2 * c * D * 2                        # x, xr: 2 bufs, bf16
               + 2 * c * 128 * 4                        # labels tile (lane-padded i32)
               + 2 * c * CP * 2                         # logits out tile (bf16), 2 bufs
               + 2 * 8 * 128 * 4                        # partial out tile
               + (D * d_ff + d_ff * D + D * CP) * 2     # bf16 weights, single buffer
               + 8 * (d_ff + 5 * D + 2 * CP) * 4        # biases / LN params / cw
               + 2 * c * d_ff * 4)                      # internal scratch for f32 `h`
        if est > vmem_budget:
            continue
        n_pad = _round_up(N128, c)
        n_tiles = n_pad // c
        key = (n_pad - N, 0 if n_tiles >= 2 else 1, -c)
        if best is None or key < best[1]:
            best = ((c, n_pad, est), key)
    assert best is not None, "no row tile fits the VMEM budget"
    return best[0]


def classifier_head_and_loss(dec_out, dec_out_res, labels, class_weights, params):
    """dec_out, dec_out_res: (N, D) with N = B*T; labels: (N,) int.

    Returns ((N, n_classes) f32 logits, scalar weighted-CE loss).
    """
    N, D = dec_out.shape
    d_ff = params["w1"].shape[1]
    n_classes = params["wp"].shape[1]
    CP = max(128, _round_up(n_classes, 128))   # lane-dense class dimension

    tm_eff, N_pad, vmem_est = _pick_tile(N, D, d_ff, CP)
    num_tiles = N_pad // tm_eff
    pad_rows = N_pad - N

    # Stream activations as bf16 (kernel upcasts for elementwise math).
    x = jnp.pad(dec_out.astype(jnp.bfloat16), ((0, pad_rows), (0, 0)))
    xr = jnp.pad(dec_out_res.astype(jnp.bfloat16), ((0, pad_rows), (0, 0)))
    # Padded rows get label == n_classes whose padded class weight is 0.
    lbl = jnp.pad(labels.astype(jnp.int32), (0, pad_rows),
                  constant_values=n_classes).reshape(N_pad, 1)

    wp_pad = jnp.zeros((D, CP), jnp.bfloat16).at[:, :n_classes].set(
        params["wp"].astype(jnp.bfloat16))
    bp_pad = jnp.zeros((1, CP), jnp.float32).at[:, :n_classes].set(
        params["bp"].reshape(1, -1).astype(jnp.float32))
    cw_pad = jnp.zeros((1, CP), jnp.float32).at[:, :n_classes].set(
        class_weights.reshape(1, -1).astype(jnp.float32))

    w1 = params["w1"].astype(jnp.bfloat16)
    w2 = params["w2"].astype(jnp.bfloat16)

    row = lambda shape: pl.BlockSpec(shape, lambda i: (i, 0))
    # Constant-index-map operands: fetched once, single VMEM buffer.
    full = lambda shape: pl.BlockSpec(shape, lambda i: (0, 0),
                                      pipeline_mode=pl.Buffered(1))

    kernel = functools.partial(head_loss_kernel, n_classes=n_classes)

    flops = 2 * N_pad * D * (2 * d_ff + CP)
    bytes_accessed = (2 * N_pad * D * 2 + N_pad * 4 + N_pad * CP * 2
                      + num_tiles * 8 * 128 * 4
                      + (D * d_ff + d_ff * D + D * CP) * 2
                      + (d_ff + 5 * D + 2 * CP) * 4)
    cost = pl.CostEstimate(flops=flops,
                           transcendentals=N_pad * (CP + 3),
                           bytes_accessed=bytes_accessed)

    logits_pad, partial = pl.pallas_call(
        kernel,
        out_shape=(jax.ShapeDtypeStruct((N_pad, CP), jnp.bfloat16),
                   jax.ShapeDtypeStruct((num_tiles * 8, 128), jnp.float32)),
        grid=(num_tiles,),
        in_specs=[row((tm_eff, D)), row((tm_eff, D)), row((tm_eff, 1)),
                  full((D, d_ff)), full((1, d_ff)),
                  full((d_ff, D)), full((1, D)),
                  full((1, D)), full((1, D)),
                  full((1, D)), full((1, D)),
                  full((D, CP)), full((1, CP)), full((1, CP))],
        out_specs=(pl.BlockSpec((tm_eff, CP), lambda i: (i, 0)),
                   pl.BlockSpec((8, 128), lambda i: (i, 0))),
        compiler_params=pltpu.CompilerParams(
            dimension_semantics=("parallel",),
            vmem_limit_bytes=int(min(48 * 2**20, max(16 * 2**20, 2 * vmem_est)))),
        cost_estimate=cost,
    )(x, xr, lbl,
      w1, params["b1"], w2, params["b2"],
      params["g_ffn"], params["be_ffn"], params["g"], params["be"],
      wp_pad, bp_pad, cw_pad)

    logits = logits_pad[:N, :n_classes].astype(jnp.float32)
    parts = partial.reshape(num_tiles, 8, 128)
    # PyTorch weighted CrossEntropyLoss: sum(w_i * nll_i) / sum(w_i)
    loss = jnp.sum(parts[:, 0, 0]) / jnp.sum(parts[:, 0, 1])
    return logits, loss


def _reference(x, xr, labels, class_w, params):
    """Plain-JAX reference (same bf16 casting on inputs and all matmuls)."""
    xb = x.astype(jnp.bfloat16)
    xrb = xr.astype(jnp.bfloat16)
    xf = xb.astype(jnp.float32)
    xrf = xrb.astype(jnp.float32)
    w1 = params["w1"].astype(jnp.bfloat16)
    w2 = params["w2"].astype(jnp.bfloat16)
    wp = params["wp"].astype(jnp.bfloat16)
    h = jnp.dot(xrb, w1, preferred_element_type=jnp.float32) + params["b1"]
    h = jnp.maximum(h, 0.0)
    ffn = jnp.dot(h.astype(jnp.bfloat16), w2,
                  preferred_element_type=jnp.float32) + params["b2"]
    ffn = _layer_norm(ffn + xrf, params["g_ffn"], params["be_ffn"])
    y = _layer_norm(xf + ffn, params["g"], params["be"])
    logits = jnp.dot(y.astype(jnp.bfloat16), wp,
                     preferred_element_type=jnp.float32) + params["bp"]
    logp = jax.nn.log_softmax(logits, axis=-1)
    nll = -jnp.take_along_axis(logp, labels[:, None], axis=-1)[:, 0]
    w = class_w[labels]
    loss = jnp.sum(w * nll) / jnp.sum(w)
    return logits, loss


if __name__ == "__main__":
    # Small config consistent with the module:
    #   d_model=16, src_input_size=8  -> D = d_model*src_input_size = 128
    #   d_ff = 4*D = 512, n_classes = 2 (forward reshapes logits to (-1, 2))
    B, T = 2, 8
    d_model, src_input_size = 16, 8
    D = d_model * src_input_size
    d_ff = 4 * D
    n_classes = 2

    key = jax.random.PRNGKey(0)
    ks = jax.random.split(key, 8)

    dec_outputs = jax.random.normal(ks[0], (B, T, D), jnp.float32)
    dec_outputs_res = jax.random.normal(ks[1], (B, T, D), jnp.float32)
    y_true = jax.random.randint(ks[2], (B * T,), 0, n_classes)

    params = dict(
        w1=jax.random.normal(ks[3], (D, d_ff), jnp.float32) * 0.02,
        b1=jnp.zeros((1, d_ff), jnp.float32),
        w2=jax.random.normal(ks[4], (d_ff, D), jnp.float32) * 0.02,
        b2=jnp.zeros((1, D), jnp.float32),
        g_ffn=jnp.ones((1, D), jnp.float32),
        be_ffn=jnp.zeros((1, D), jnp.float32),
        g=jnp.ones((1, D), jnp.float32),
        be=jnp.zeros((1, D), jnp.float32),
        wp=jax.random.normal(ks[5], (D, n_classes), jnp.float32) * 0.02,
        bp=jnp.zeros((1, n_classes), jnp.float32),
    )

    x = dec_outputs.reshape(B * T, D)
    xr = dec_outputs_res.reshape(B * T, D)

    # sklearn 'balanced' class weights: n_samples / (n_classes * count[c])
    counts = jnp.stack([jnp.sum(y_true == c) for c in range(n_classes)]).astype(jnp.float32)
    class_w = y_true.size / (n_classes * counts)

    logits_flat, loss = classifier_head_and_loss(x, xr, y_true, class_w, params)
    logits = logits_flat.reshape(B, T, n_classes)
    jax.block_until_ready((logits, loss))

    # plain-JAX reference check (kernel logits are bf16-rounded on writeback)
    ref_logits, ref_loss = _reference(x, xr, y_true, class_w, params)
    assert jnp.allclose(logits_flat, ref_logits, atol=1e-2, rtol=1e-2)
    assert jnp.allclose(loss, ref_loss, atol=5e-3, rtol=5e-3)

    print("KERNEL_OK")
</pallas_src>

<mosaic_0001>
module attributes {stable_mosaic.version = 11 : i64} {
  func.func @head_loss_kernel(%arg0: i32, %arg1: memref<128x128xbf16, #tpu.memory_space<vmem>>, %arg2: memref<128x128xbf16, #tpu.memory_space<vmem>>, %arg3: memref<128x1xi32, #tpu.memory_space<vmem>>, %arg4: memref<128x512xbf16, #tpu.memory_space<vmem>>, %arg5: memref<1x512xf32, #tpu.memory_space<vmem>>, %arg6: memref<512x128xbf16, #tpu.memory_space<vmem>>, %arg7: memref<1x128xf32, #tpu.memory_space<vmem>>, %arg8: memref<1x128xf32, #tpu.memory_space<vmem>>, %arg9: memref<1x128xf32, #tpu.memory_space<vmem>>, %arg10: memref<1x128xf32, #tpu.memory_space<vmem>>, %arg11: memref<1x128xf32, #tpu.memory_space<vmem>>, %arg12: memref<128x128xbf16, #tpu.memory_space<vmem>>, %arg13: memref<1x128xf32, #tpu.memory_space<vmem>>, %arg14: memref<1x128xf32, #tpu.memory_space<vmem>>, %arg15: memref<128x128xbf16, #tpu.memory_space<vmem>>, %arg16: memref<8x128xf32, #tpu.memory_space<vmem>>) attributes {dimension_semantics = [#tpu.dimension_semantics<parallel>], iteration_bounds = array<i64: 1>, scalar_prefetch = 0 : i64, scratch_operands = 0 : i64, tpu.core_type = #tpu.core_type<tc>, window_params = [{transform_indices = @transform_0, window_bounds = array<i64: 128, 128>}, {transform_indices = @transform_1, window_bounds = array<i64: 128, 128>}, {transform_indices = @transform_2, window_bounds = array<i64: 128, 1>}, {pipeline_mode = #tpu.pipeline_mode<synchronous>, transform_indices = @transform_3, window_bounds = array<i64: 128, 512>}, {pipeline_mode = #tpu.pipeline_mode<synchronous>, transform_indices = @transform_4, window_bounds = array<i64: 1, 512>}, {pipeline_mode = #tpu.pipeline_mode<synchronous>, transform_indices = @transform_5, window_bounds = array<i64: 512, 128>}, {pipeline_mode = #tpu.pipeline_mode<synchronous>, transform_indices = @transform_6, window_bounds = array<i64: 1, 128>}, {pipeline_mode = #tpu.pipeline_mode<synchronous>, transform_indices = @transform_7, window_bounds = array<i64: 1, 128>}, {pipeline_mode = #tpu.pipeline_mode<synchronous>, transform_indices = @transform_8, window_bounds = array<i64: 1, 128>}, {pipeline_mode = #tpu.pipeline_mode<synchronous>, transform_indices = @transform_9, window_bounds = array<i64: 1, 128>}, {pipeline_mode = #tpu.pipeline_mode<synchronous>, transform_indices = @transform_10, window_bounds = array<i64: 1, 128>}, {pipeline_mode = #tpu.pipeline_mode<synchronous>, transform_indices = @transform_11, window_bounds = array<i64: 128, 128>}, {pipeline_mode = #tpu.pipeline_mode<synchronous>, transform_indices = @transform_12, window_bounds = array<i64: 1, 128>}, {pipeline_mode = #tpu.pipeline_mode<synchronous>, transform_indices = @transform_13, window_bounds = array<i64: 1, 128>}, {transform_indices = @transform_14, window_bounds = array<i64: 128, 128>}, {transform_indices = @transform_15, window_bounds = array<i64: 8, 128>}]} {
    %c0 = arith.constant 0 : index
    %c0_0 = arith.constant 0 : index
    %0 = vector.load %arg2[%c0, %c0_0] : memref<128x128xbf16, #tpu.memory_space<vmem>>, vector<128x128xbf16>
    %c0_1 = arith.constant 0 : index
    %c0_2 = arith.constant 0 : index
    %1 = vector.load %arg1[%c0_1, %c0_2] : memref<128x128xbf16, #tpu.memory_space<vmem>>, vector<128x128xbf16>
    %2 = arith.extf %1 : vector<128x128xbf16> to vector<128x128xf32>
    %3 = arith.extf %0 : vector<128x128xbf16> to vector<128x128xf32>
    %c0_3 = arith.constant 0 : index
    %c0_4 = arith.constant 0 : index
    %4 = vector.load %arg4[%c0_3, %c0_4] : memref<128x512xbf16, #tpu.memory_space<vmem>>, vector<128x512xbf16>
    %cst = arith.constant dense<0.000000e+00> : vector<128x512xf32>
    %5 = tpu.matmul %0, %4, %cst {dimension_numbers = #tpu.dot_dimension_numbers<[1], [0], [0], [1], [0, 0, 1, 1], [], []>} : vector<128x128xbf16>, vector<128x512xbf16>, vector<128x512xf32> -> vector<128x512xf32>
    %c0_5 = arith.constant 0 : index
    %c0_6 = arith.constant 0 : index
    %6 = vector.load %arg5[%c0_5, %c0_6] : memref<1x512xf32, #tpu.memory_space<vmem>>, vector<1x512xf32>
    %7 = vector.broadcast %6 : vector<1x512xf32> to vector<128x512xf32>
    %8 = arith.addf %5, %7 : vector<128x512xf32>
    %cst_7 = arith.constant 0.000000e+00 : f32
    %9 = vector.broadcast %cst_7 : f32 to vector<128x512xf32>
    %10 = arith.maximumf %8, %9 : vector<128x512xf32>
    %11 = arith.truncf %10 : vector<128x512xf32> to vector<128x512xbf16>
    %c0_8 = arith.constant 0 : index
    %c0_9 = arith.constant 0 : index
    %12 = vector.load %arg6[%c0_8, %c0_9] : memref<512x128xbf16, #tpu.memory_space<vmem>>, vector<512x128xbf16>
    %cst_10 = arith.constant dense<0.000000e+00> : vector<128x128xf32>
    %13 = tpu.matmul %11, %12, %cst_10 {dimension_numbers = #tpu.dot_dimension_numbers<[1], [0], [0], [1], [0, 0, 1, 1], [], []>} : vector<128x512xbf16>, vector<512x128xbf16>, vector<128x128xf32> -> vector<128x128xf32>
    %c0_11 = arith.constant 0 : index
    %c0_12 = arith.constant 0 : index
    %14 = vector.load %arg7[%c0_11, %c0_12] : memref<1x128xf32, #tpu.memory_space<vmem>>, vector<1x128xf32>
    %15 = vector.broadcast %14 : vector<1x128xf32> to vector<128x128xf32>
    %16 = arith.addf %13, %15 : vector<128x128xf32>
    %17 = arith.addf %16, %3 : vector<128x128xf32>
    %c0_13 = arith.constant 0 : index
    %c0_14 = arith.constant 0 : index
    %18 = vector.load %arg8[%c0_13, %c0_14] : memref<1x128xf32, #tpu.memory_space<vmem>>, vector<1x128xf32>
    %c0_15 = arith.constant 0 : index
    %c0_16 = arith.constant 0 : index
    %19 = vector.load %arg9[%c0_15, %c0_16] : memref<1x128xf32, #tpu.memory_space<vmem>>, vector<1x128xf32>
    %cst_17 = arith.constant dense<0.000000e+00> : vector<128xf32>
    %20 = vector.multi_reduction <add>, %17, %cst_17 [1] : vector<128x128xf32> to vector<128xf32>
    %21 = vector.shape_cast %20 : vector<128xf32> to vector<128x1xf32>
    %cst_18 = arith.constant 1.280000e+02 : f32
    %22 = vector.broadcast %cst_18 : f32 to vector<128x1xf32>
    %23 = arith.divf %21, %22 : vector<128x1xf32>
    %24 = vector.broadcast %23 : vector<128x1xf32> to vector<128x128xf32>
    %25 = arith.subf %17, %24 : vector<128x128xf32>
    %26 = arith.mulf %25, %25 : vector<128x128xf32>
    %cst_19 = arith.constant dense<0.000000e+00> : vector<128xf32>
    %27 = vector.multi_reduction <add>, %26, %cst_19 [1] : vector<128x128xf32> to vector<128xf32>
    %28 = vector.shape_cast %27 : vector<128xf32> to vector<128x1xf32>
    %cst_20 = arith.constant 1.280000e+02 : f32
    %29 = vector.broadcast %cst_20 : f32 to vector<128x1xf32>
    %30 = arith.divf %28, %29 : vector<128x1xf32>
    %31 = vector.broadcast %23 : vector<128x1xf32> to vector<128x128xf32>
    %32 = arith.subf %17, %31 : vector<128x128xf32>
    %cst_21 = arith.constant 9.99999974E-6 : f32
    %33 = vector.broadcast %cst_21 : f32 to vector<128x1xf32>
    %34 = arith.addf %30, %33 : vector<128x1xf32>
    %35 = math.rsqrt %34 : vector<128x1xf32>
    %36 = vector.broadcast %35 : vector<128x1xf32> to vector<128x128xf32>
    %37 = arith.mulf %32, %36 : vector<128x128xf32>
    %38 = vector.broadcast %18 : vector<1x128xf32> to vector<128x128xf32>
    %39 = arith.mulf %37, %38 : vector<128x128xf32>
    %40 = vector.broadcast %19 : vector<1x128xf32> to vector<128x128xf32>
    %41 = arith.addf %39, %40 : vector<128x128xf32>
    %42 = arith.addf %2, %41 : vector<128x128xf32>
    %c0_22 = arith.constant 0 : index
    %c0_23 = arith.constant 0 : index
    %43 = vector.load %arg10[%c0_22, %c0_23] : memref<1x128xf32, #tpu.memory_space<vmem>>, vector<1x128xf32>
    %c0_24 = arith.constant 0 : index
    %c0_25 = arith.constant 0 : index
    %44 = vector.load %arg11[%c0_24, %c0_25] : memref<1x128xf32, #tpu.memory_space<vmem>>, vector<1x128xf32>
    %cst_26 = arith.constant dense<0.000000e+00> : vector<128xf32>
    %45 = vector.multi_reduction <add>, %42, %cst_26 [1] : vector<128x128xf32> to vector<128xf32>
    %46 = vector.shape_cast %45 : vector<128xf32> to vector<128x1xf32>
    %cst_27 = arith.constant 1.280000e+02 : f32
    %47 = vector.broadcast %cst_27 : f32 to vector<128x1xf32>
    %48 = arith.divf %46, %47 : vector<128x1xf32>
    %49 = vector.broadcast %48 : vector<128x1xf32> to vector<128x128xf32>
    %50 = arith.subf %42, %49 : vector<128x128xf32>
    %51 = arith.mulf %50, %50 : vector<128x128xf32>
    %cst_28 = arith.constant dense<0.000000e+00> : vector<128xf32>
    %52 = vector.multi_reduction <add>, %51, %cst_28 [1] : vector<128x128xf32> to vector<128xf32>
    %53 = vector.shape_cast %52 : vector<128xf32> to vector<128x1xf32>
    %cst_29 = arith.constant 1.280000e+02 : f32
    %54 = vector.broadcast %cst_29 : f32 to vector<128x1xf32>
    %55 = arith.divf %53, %54 : vector<128x1xf32>
    %56 = vector.broadcast %48 : vector<128x1xf32> to vector<128x128xf32>
    %57 = arith.subf %42, %56 : vector<128x128xf32>
    %cst_30 = arith.constant 9.99999974E-6 : f32
    %58 = vector.broadcast %cst_30 : f32 to vector<128x1xf32>
    %59 = arith.addf %55, %58 : vector<128x1xf32>
    %60 = math.rsqrt %59 : vector<128x1xf32>
    %61 = vector.broadcast %60 : vector<128x1xf32> to vector<128x128xf32>
    %62 = arith.mulf %57, %61 : vector<128x128xf32>
    %63 = vector.broadcast %43 : vector<1x128xf32> to vector<128x128xf32>
    %64 = arith.mulf %62, %63 : vector<128x128xf32>
    %65 = vector.broadcast %44 : vector<1x128xf32> to vector<128x128xf32>
    %66 = arith.addf %64, %65 : vector<128x128xf32>
    %67 = arith.truncf %66 : vector<128x128xf32> to vector<128x128xbf16>
    %c0_31 = arith.constant 0 : index
    %c0_32 = arith.constant 0 : index
    %68 = vector.load %arg12[%c0_31, %c0_32] : memref<128x128xbf16, #tpu.memory_space<vmem>>, vector<128x128xbf16>
    %cst_33 = arith.constant dense<0.000000e+00> : vector<128x128xf32>
    %69 = tpu.matmul %67, %68, %cst_33 {dimension_numbers = #tpu.dot_dimension_numbers<[1], [0], [0], [1], [0, 0, 1, 1], [], []>} : vector<128x128xbf16>, vector<128x128xbf16>, vector<128x128xf32> -> vector<128x128xf32>
    %c0_34 = arith.constant 0 : index
    %c0_35 = arith.constant 0 : index
    %70 = vector.load %arg13[%c0_34, %c0_35] : memref<1x128xf32, #tpu.memory_space<vmem>>, vector<1x128xf32>
    %71 = vector.broadcast %70 : vector<1x128xf32> to vector<128x128xf32>
    %72 = arith.addf %69, %71 : vector<128x128xf32>
    %73 = arith.truncf %72 : vector<128x128xf32> to vector<128x128xbf16>
    %c0_36 = arith.constant 0 : index
    %c0_37 = arith.constant 0 : index
    %74 = vector.load %arg15[%c0_36, %c0_37] : memref<128x128xbf16, #tpu.memory_space<vmem>>, vector<128x128xbf16>
    tpu.vector_store %arg15[%c0_36, %c0_37], %73 {strides = array<i32>} : memref<128x128xbf16, #tpu.memory_space<vmem>>, vector<128x128xbf16>,
    %75 = tpu.iota {dimensions = array<i32: 1>} : vector<128x128xi32>
    %c2_i32 = arith.constant 2 : i32
    %76 = vector.broadcast %c2_i32 : i32 to vector<128x128xi32>
    %77 = arith.cmpi slt, %75, %76 : vector<128x128xi32>
    %cst_38 = arith.constant -1.000000e+30 : f32
    %78 = vector.broadcast %cst_38 : f32 to vector<128x128xf32>
    %79 = arith.select %77, %72, %78 : vector<128x128xi1>, vector<128x128xf32>
    %cst_39 = arith.constant dense<0xFF800000> : vector<128xf32>
    %80 = vector.multi_reduction <maximumf>, %79, %cst_39 [1] : vector<128x128xf32> to vector<128xf32>
    %81 = vector.shape_cast %80 : vector<128xf32> to vector<128x1xf32>
    %82 = vector.broadcast %81 : vector<128x1xf32> to vector<128x128xf32>
    %83 = arith.subf %79, %82 : vector<128x128xf32>
    %84 = math.exp %83 : vector<128x128xf32>
    %cst_40 = arith.constant dense<0.000000e+00> : vector<128xf32>
    %85 = vector.multi_reduction <add>, %84, %cst_40 [1] : vector<128x128xf32> to vector<128xf32>
    %86 = vector.shape_cast %85 : vector<128xf32> to vector<128x1xf32>
    %87 = math.log %86 : vector<128x1xf32>
    %88 = arith.addf %81, %87 : vector<128x1xf32>
    %c0_41 = arith.constant 0 : index
    %c0_42 = arith.constant 0 : index
    %89 = vector.load %arg3[%c0_41, %c0_42] : memref<128x1xi32, #tpu.memory_space<vmem>>, vector<128x1xi32>
    %90 = vector.broadcast %89 : vector<128x1xi32> to vector<128x128xi32>
    %91 = arith.cmpi eq, %75, %90 : vector<128x128xi32>
    %cst_43 = arith.constant 0.000000e+00 : f32
    %92 = vector.broadcast %cst_43 : f32 to vector<128x128xf32>
    %93 = arith.select %91, %72, %92 : vector<128x128xi1>, vector<128x128xf32>
    %cst_44 = arith.constant dense<0.000000e+00> : vector<128xf32>
    %94 = vector.multi_reduction <add>, %93, %cst_44 [1] : vector<128x128xf32> to vector<128xf32>
    %95 = vector.shape_cast %94 : vector<128xf32> to vector<128x1xf32>
    %c0_45 = arith.constant 0 : index
    %c0_46 = arith.constant 0 : index
    %96 = vector.load %arg14[%c0_45, %c0_46] : memref<1x128xf32, #tpu.memory_space<vmem>>, vector<1x128xf32>
    %cst_47 = arith.constant 0.000000e+00 : f32
    %97 = vector.shape_cast %96 : vector<1x128xf32> to vector<1x128xf32>
    %98 = vector.broadcast %97 : vector<1x128xf32> to vector<128x128xf32>
    %99 = vector.broadcast %cst_47 : f32 to vector<128x128xf32>
    %100 = arith.select %91, %98, %99 : vector<128x128xi1>, vector<128x128xf32>
    %cst_48 = arith.constant dense<0.000000e+00> : vector<128xf32>
    %101 = vector.multi_reduction <add>, %100, %cst_48 [1] : vector<128x128xf32> to vector<128xf32>
    %102 = vector.shape_cast %101 : vector<128xf32> to vector<128x1xf32>
    %103 = arith.subf %88, %95 : vector<128x1xf32>
    %104 = arith.mulf %102, %103 : vector<128x1xf32>
    %105 = vector.shape_cast %104 : vector<128x1xf32> to vector<1x128x1xf32>
    %cst_49 = arith.constant dense<0.000000e+00> : vector<1xf32>
    %106 = vector.multi_reduction <add>, %105, %cst_49 [1, 2] : vector<1x128x1xf32> to vector<1xf32>
    %107 = vector.shape_cast %106 : vector<1xf32> to vector<1x1x1xf32>
    %108 = vector.extract %107[0, 0, 0] : f32 from vector<1x1x1xf32>
    %109 = vector.shape_cast %102 : vector<128x1xf32> to vector<1x128x1xf32>
    %cst_50 = arith.constant dense<0.000000e+00> : vector<1xf32>
    %110 = vector.multi_reduction <add>, %109, %cst_50 [1, 2] : vector<1x128x1xf32> to vector<1xf32>
    %111 = vector.shape_cast %110 : vector<1xf32> to vector<1x1x1xf32>
    %112 = vector.extract %111[0, 0, 0] : f32 from vector<1x1x1xf32>
    %113 = tpu.iota {dimensions = array<i32: 1>} : vector<8x128xi32>
    %c0_i32 = arith.constant 0 : i32
    %114 = vector.broadcast %c0_i32 : i32 to vector<8x128xi32>
    %115 = arith.cmpi eq, %113, %114 : vector<8x128xi32>
    %c1_i32 = arith.constant 1 : i32
    %116 = vector.broadcast %c1_i32 : i32 to vector<8x128xi32>
    %117 = arith.cmpi eq, %113, %116 : vector<8x128xi32>
    %cst_51 = arith.constant 0.000000e+00 : f32
    %118 = vector.broadcast %112 : f32 to vector<8x128xf32>
    %119 = vector.broadcast %cst_51 : f32 to vector<8x128xf32>
    %120 = arith.select %117, %118, %119 : vector<8x128xi1>, vector<8x128xf32>
    %121 = vector.broadcast %108 : f32 to vector<8x128xf32>
    %122 = arith.select %115, %121, %120 : vector<8x128xi1>, vector<8x128xf32>
    %c0_52 = arith.constant 0 : index
    %c0_53 = arith.constant 0 : index
    %123 = vector.load %arg16[%c0_52, %c0_53] : memref<8x128xf32, #tpu.memory_space<vmem>>, vector<8x128xf32>
    tpu.vector_store %arg16[%c0_52, %c0_53], %122 {strides = array<i32>} : memref<8x128xf32, #tpu.memory_space<vmem>>, vector<8x128xf32>,
    return
  }
  func.func @transform_0(%arg0: i32) -> (i32, i32) {
    %c0_i32 = arith.constant 0 : i32
    %c0_i32_0 = arith.constant 0 : i32
    return %arg0, %c0_i32 : i32, i32
  }
  func.func @transform_1(%arg0: i32) -> (i32, i32) {
    %c0_i32 = arith.constant 0 : i32
    %c0_i32_0 = arith.constant 0 : i32
    return %arg0, %c0_i32 : i32, i32
  }
  func.func @transform_2(%arg0: i32) -> (i32, i32) {
    %c0_i32 = arith.constant 0 : i32
    %c0_i32_0 = arith.constant 0 : i32
    return %arg0, %c0_i32 : i32, i32
  }
  func.func @transform_3(%arg0: i32) -> (i32, i32) {
    %c0_i32 = arith.constant 0 : i32
    %c0_i32_0 = arith.constant 0 : i32
    %c0_i32_1 = arith.constant 0 : i32
    return %c0_i32, %c0_i32_0 : i32, i32
  }
  func.func @transform_4(%arg0: i32) -> (i32, i32) {
    %c0_i32 = arith.constant 0 : i32
    %c0_i32_0 = arith.constant 0 : i32
    %c0_i32_1 = arith.constant 0 : i32
    return %c0_i32, %c0_i32_0 : i32, i32
  }
  func.func @transform_5(%arg0: i32) -> (i32, i32) {
    %c0_i32 = arith.constant 0 : i32
    %c0_i32_0 = arith.constant 0 : i32
    %c0_i32_1 = arith.constant 0 : i32
    return %c0_i32, %c0_i32_0 : i32, i32
  }
  func.func @transform_6(%arg0: i32) -> (i32, i32) {
    %c0_i32 = arith.constant 0 : i32
    %c0_i32_0 = arith.constant 0 : i32
    %c0_i32_1 = arith.constant 0 : i32
    return %c0_i32, %c0_i32_0 : i32, i32
  }
  func.func @transform_7(%arg0: i32) -> (i32, i32) {
    %c0_i32 = arith.constant 0 : i32
    %c0_i32_0 = arith.constant 0 : i32
    %c0_i32_1 = arith.constant 0 : i32
    return %c0_i32, %c0_i32_0 : i32, i32
  }
  func.func @transform_8(%arg0: i32) -> (i32, i32) {
    %c0_i32 = arith.constant 0 : i32
    %c0_i32_0 = arith.constant 0 : i32
    %c0_i32_1 = arith.constant 0 : i32
    return %c0_i32, %c0_i32_0 : i32, i32
  }
  func.func @transform_9(%arg0: i32) -> (i32, i32) {
    %c0_i32 = arith.constant 0 : i32
    %c0_i32_0 = arith.constant 0 : i32
    %c0_i32_1 = arith.constant 0 : i32
    return %c0_i32, %c0_i32_0 : i32, i32
  }
  func.func @transform_10(%arg0: i32) -> (i32, i32) {
    %c0_i32 = arith.constant 0 : i32
    %c0_i32_0 = arith.constant 0 : i32
    %c0_i32_1 = arith.constant 0 : i32
    return %c0_i32, %c0_i32_0 : i32, i32
  }
  func.func @transform_11(%arg0: i32) -> (i32, i32) {
    %c0_i32 = arith.constant 0 : i32
    %c0_i32_0 = arith.constant 0 : i32
    %c0_i32_1 = arith.constant 0 : i32
    return %c0_i32, %c0_i32_0 : i32, i32
  }
  func.func @transform_12(%arg0: i32) -> (i32, i32) {
    %c0_i32 = arith.constant 0 : i32
    %c0_i32_0 = arith.constant 0 : i32
    %c0_i32_1 = arith.constant 0 : i32
    return %c0_i32, %c0_i32_0 : i32, i32
  }
  func.func @transform_13(%arg0: i32) -> (i32, i32) {
    %c0_i32 = arith.constant 0 : i32
    %c0_i32_0 = arith.constant 0 : i32
    %c0_i32_1 = arith.constant 0 : i32
    return %c0_i32, %c0_i32_0 : i32, i32
  }
  func.func @transform_14(%arg0: i32) -> (i32, i32) {
    %c0_i32 = arith.constant 0 : i32
    %c0_i32_0 = arith.constant 0 : i32
    return %arg0, %c0_i32 : i32, i32
  }
  func.func @transform_15(%arg0: i32) -> (i32, i32) {
    %c0_i32 = arith.constant 0 : i32
    %c0_i32_0 = arith.constant 0 : i32
    return %arg0, %c0_i32 : i32, i32
  }
}

</mosaic_0001>

<bundles_post_ra>
// kernel: tpu_custom_call.1
= control target key start
LH: loop header
LB: loop body
LE: loop exit
PB: predicated region body
PF: predicated region fallthrough
CT: control target
= control target key end

     0   :  { %21 = vsyncpa [#allocation3], 0  ;;  %s4432_s0 = inlined_call_operand.vmem [shape: bf16[128,128], index: 0, kind: input, shape index: {}]   ;;  %s4433_s1 = inlined_call_operand.vmem [shape: bf16[128,128], index: 1, kind: input, shape index: {}]   ;;  %s4434_s2 = inlined_call_operand.vmem [shape: s32[128,1], index: 2, kind: input, shape index: {}]   ;;  %s4435_s3 = inlined_call_operand.hbm [shape: bf16[128,512], index: 3, kind: input, shape index: {}]   ;;  %s4436_s4 = inlined_call_operand.vmem [shape: f32[1,512], index: 4, kind: input, shape index: {}]   ;;  %s4437_s5 = inlined_call_operand.hbm [shape: bf16[512,128], index: 5, kind: input, shape index: {}]   ;;  %s4438_s6 = inlined_call_operand.vmem [shape: f32[1,128], index: 6, kind: input, shape index: {}]   ;;  %s4439_s7 = inlined_call_operand.vmem [shape: f32[1,128], index: 7, kind: input, shape index: {}]   ;;  %s4440_s8 = inlined_call_operand.vmem [shape: f32[1,128], index: 8, kind: input, shape index: {}]   ;;  %s4441_s9 = inlined_call_operand.vmem [shape: f32[1,128], index: 9, kind: input, shape index: {}]   ;;  %s4442_s10 = inlined_call_operand.vmem [shape: f32[1,128], index: 10, kind: input, shape index: {}]   ;;  %s4443_s11 = inlined_call_operand.hbm [shape: bf16[128,128], index: 11, kind: input, shape index: {}]   ;;  %s4444_s12 = inlined_call_operand.vmem [shape: f32[1,128], index: 12, kind: input, shape index: {}]   ;;  %s4445_s13 = inlined_call_operand.vmem [shape: f32[1,128], index: 13, kind: input, shape index: {}]   ;;  %s4446_s14 = inlined_call_operand.hbm [shape: bf16[128,128], index: 14, kind: output, shape index: {0}]   ;;  %s4447_s15 = inlined_call_operand.hbm [shape: f32[8,128], index: 15, kind: output, shape index: {1}]  }
   0x1   :  { %22 = vsyncpa [#allocation6], 0 }
   0x2   :  { %23 = vsyncpa [#allocation4], 0 }
   0x3   :  { %24 = vsyncpa [#allocation10], 0  ;;  %s3208_s18 = smov [#allocation5]   ;;  %s3090_s22 = scalar_lea.hbm %s4437_s5, 4096 }
   0x4   :  { %s50_s19 = sshll.u32 %s3208_s18, 4  ;;  %p3091_p0 = scmp.ne.s32.totalorder %s4437_s5, %s3090_s22  ;;  %s51_s19 = int_to_ptr.vmem [resolvable:$true] %s50_s19 }
   0x5   :  { %p3094_p1 = scmp.lt.u32.totalorder %s3090_s22, %s4437_s5 }
   0x7   :  { %p3096_p2 = pnand %p3094_p1, %p3091_p0 }
   0x9   :  { %3099 = shalt.err (!%p3096_p2)
}
   0xa   :  { %s3100_s27 = scalar_lea.vmem %s51_s19, 4096  ;;  %p3105_p4 = scmp.lt.s32.totalorder %s51_s19, %s51_s19 }
   0xb   :  { %p3101_p3 = scmp.ne.s32.totalorder %s51_s19, %s3100_s27  ;;  %p3106_p5 = scmp.lt.s32.totalorder %s3100_s27, %s3100_s27 }
   0xd   :  { %p3107_p6 = por %p3106_p5, %p3105_p4 }
   0xf   :  { %p3108_p7 = pnand %p3107_p6, %p3101_p3 }
  0x11   :  { %3111 = shalt.err (!%p3108_p7)
}
  0x12   :  { %s4448_s28 = smov 64   ;;  %s3210_s29 = smov 4  }
  0x13   :  { %56 = dma.hbm_to_vmem [thread:$0]  %s4437_s5, 4096, %s51_s19, [#allocation6], %s4448_s28, %s4448_s28, %s3210_s29  }
  0x14   :  { %s3211_s17 = smov [#allocation2]   ;;  %s3112_s22 = scalar_lea.hbm %s4435_s3, 4096 }
  0x15   :  { %s36_s18 = sshll.u32 %s3211_s17, 4  ;;  %p3113_p8 = scmp.ne.s32.totalorder %s4435_s3, %s3112_s22  ;;  %s37_s18 = int_to_ptr.vmem [resolvable:$true] %s36_s18 }
  0x16   :  { %p3116_p9 = scmp.lt.u32.totalorder %s3112_s22, %s4435_s3 }
  0x18   :  { %p3118_p10 = pnand %p3116_p9, %p3113_p8 }
  0x1a   :  { %3121 = shalt.err (!%p3118_p10)
}
  0x1b   :  { %s3122_s27 = scalar_lea.vmem %s37_s18, 4096  ;;  %p3127_p12 = scmp.lt.s32.totalorder %s37_s18, %s37_s18 }
  0x1c   :  { %p3123_p11 = scmp.ne.s32.totalorder %s37_s18, %s3122_s27  ;;  %p3128_p13 = scmp.lt.s32.totalorder %s3122_s27, %s3122_s27 }
  0x1e   :  { %p3129_p0 = por %p3128_p13, %p3127_p12 }
  0x20   :  { %p3130_p1 = pnand %p3129_p0, %p3123_p11 }
  0x22   :  { %3133 = shalt.err (!%p3130_p1)
}
  0x23   :  { %s3212_s5 = smov 256   ;;  %s3213_s19 = smov 16  }
  0x24   :  { %42 = dma.hbm_to_vmem [thread:$0]  %s4435_s3, 4096, %s37_s18, [#allocation3], %s3212_s5, %s3212_s5, %s3213_s19  }
  0x25   :  { %s3214_s17 = smov [#allocation7]   ;;  %s3134_s23 = scalar_lea.hbm %s4443_s11, 1024 }
  0x26   :  { %s72_s20 = sshll.u32 %s3214_s17, 4  ;;  %p3135_p2 = scmp.ne.s32.totalorder %s4443_s11, %s3134_s23  ;;  %s73_s20 = int_to_ptr.vmem [resolvable:$true] %s72_s20 }
  0x27   :  { %p3138_p3 = scmp.lt.u32.totalorder %s3134_s23, %s4443_s11 }
  0x29   :  { %p3140_p4 = pnand %p3138_p3, %p3135_p2 }
  0x2b   :  { %3143 = shalt.err (!%p3140_p4)
}
  0x2c   :  { %s3144_s28 = scalar_lea.vmem %s73_s20, 1024  ;;  %p3149_p6 = scmp.lt.s32.totalorder %s73_s20, %s73_s20 }
  0x2d   :  { %p3145_p5 = scmp.ne.s32.totalorder %s73_s20, %s3144_s28  ;;  %p3150_p7 = scmp.lt.s32.totalorder %s3144_s28, %s3144_s28 }
  0x2f   :  { %p3151_p8 = por %p3150_p7, %p3149_p6 }
  0x31   :  { %p3152_p9 = pnand %p3151_p8, %p3145_p5 }
  0x33   :  { %3155 = shalt.err (!%p3152_p9)
}
  0x34   :  { %s4450_s3 = smov 64  }
  0x35   :  { %78 = dma.hbm_to_vmem [thread:$0]  %s4443_s11, 1024, %s73_s20, [#allocation6], %s4450_s3, %s4450_s3, %s3210_s29  }
  0x36   :  { %3200 = dma.done.wait [#allocation3], 4096  }
  0x37   :  { %3201 = vsyncadd [#allocation3], 4294963200 }
  0x38   :  { %3202 = dma.done.wait [#allocation6], 5120  }
  0x39   :  { %3203 = vsyncadd [#allocation6], 4294962176  ;;  %v3215_v0 = vmov 0   ;;  %v2858_v1 = vld [vmem:[#allocation2 + $0x4] ss:$16 sps:$4 sm:$0xff]   ;;  %v2918_v38 = vld [vmem:[#allocation5 + $0x48] sm:$0xff]  }
  0x3a   :  { %451 = vmatprep.mubr.bf16.mxu0 %v3215_v0  ;;  %564 = vmatprep.mubr.bf16.mxu1 %v3215_v0  ;;  %v2860_v2 = vld [vmem:[#allocation2 + $0xc] ss:$16 sps:$4 sm:$0xff]   ;;  %v2862_v3 = vld [vmem:[#allocation2] ss:$16 sps:$4 sm:$0xff]   ;;  %v2863_v4 = vld [vmem:[#allocation2 + $0x8] ss:$16 sps:$4 sm:$0xff]  }
  0x3b   :  { %2857 = vset.pattern.permute.xlu1 %v3215_v0  ;;  %2856 = vset.pattern.permute.xlu0 %v3215_v0  ;;  %v2864_v5 = vld [vmem:[#allocation2 + $0x24] ss:$16 sps:$4 sm:$0xff]   ;;  %v2866_v6 = vld [vmem:[#allocation2 + $0x2c] ss:$16 sps:$4 sm:$0xff]   ;;  %v2868_v7 = vld [vmem:[#allocation2 + $0x20] ss:$16 sps:$4 sm:$0xff]  }
  0x3c   :  { %419 = vmatprep.subr.bf16.mxu0 %v2858_v1  ;;  %532 = vmatprep.subr.bf16.mxu1 %v2860_v2  ;;  %v2869_v8 = vld [vmem:[#allocation2 + $0x28] ss:$16 sps:$4 sm:$0xff]   ;;  %v2870_v9 = vld [vmem:[#allocation2 + $0x44] ss:$16 sps:$4 sm:$0xff]   ;;  %v2872_v10 = vld [vmem:[#allocation2 + $0x4c] ss:$16 sps:$4 sm:$0xff]  }
  0x3d   :  { %420 = vmatpush1.bf16.msra.mxu0 %v2862_v3  ;;  %533 = vmatpush1.bf16.msra.mxu1 %v2863_v4  ;;  %v2874_v11 = vld [vmem:[#allocation2 + $0x40] ss:$16 sps:$4 sm:$0xff]   ;;  %v2875_v12 = vld [vmem:[#allocation2 + $0x48] ss:$16 sps:$4 sm:$0xff]   ;;  %v2876_v13 = vld [vmem:[#allocation2 + $0x64] ss:$16 sps:$4 sm:$0xff]  }
  0x3e   :  { %421 = vmatprep.subr.bf16.mxu0 %v2864_v5  ;;  %534 = vmatprep.subr.bf16.mxu1 %v2866_v6  ;;  %v2878_v14 = vld [vmem:[#allocation2 + $0x6c] ss:$16 sps:$4 sm:$0xff]   ;;  %v2880_v15 = vld [vmem:[#allocation2 + $0x60] ss:$16 sps:$4 sm:$0xff]   ;;  %v2881_v16 = vld [vmem:[#allocation2 + $0x68] ss:$16 sps:$4 sm:$0xff]  }
  0x3f   :  { %v2882_v17 = vld [vmem:[#allocation2 + $0x84] ss:$16 sps:$4 sm:$0xff]   ;;  %v2884_v18 = vld [vmem:[#allocation2 + $0x8c] ss:$16 sps:$4 sm:$0xff]   ;;  %v2886_v19 = vld [vmem:[#allocation2 + $0x80] ss:$16 sps:$4 sm:$0xff]  }
  0x40   :  { %v2887_v20 = vld [vmem:[#allocation2 + $0x88] ss:$16 sps:$4 sm:$0xff]   ;;  %v2888_v21 = vld [vmem:[#allocation2 + $0xa4] ss:$16 sps:$4 sm:$0xff]   ;;  %v2890_v22 = vld [vmem:[#allocation2 + $0xac] ss:$16 sps:$4 sm:$0xff]  }
  0x41   :  { %422 = vmatpush1.bf16.msra.mxu0 %v2868_v7  ;;  %535 = vmatpush1.bf16.msra.mxu1 %v2869_v8  ;;  %v2892_v23 = vld [vmem:[#allocation2 + $0xa0] ss:$16 sps:$4 sm:$0xff]   ;;  %v2893_v24 = vld [vmem:[#allocation2 + $0xa8] ss:$16 sps:$4 sm:$0xff]   ;;  %v2894_v25 = vld [vmem:[#allocation2 + $0xc4] ss:$16 sps:$4 sm:$0xff]  }
  0x42   :  { %423 = vmatprep.subr.bf16.mxu0 %v2870_v9  ;;  %536 = vmatprep.subr.bf16.mxu1 %v2872_v10  ;;  %v2896_v26 = vld [vmem:[#allocation2 + $0xcc] ss:$16 sps:$4 sm:$0xff]   ;;  %v2898_v27 = vld [vmem:[#allocation2 + $0xc0] ss:$16 sps:$4 sm:$0xff]   ;;  %v2899_v28 = vld [vmem:[#allocation2 + $0xc8] ss:$16 sps:$4 sm:$0xff]   ;;  %v191_v10 = vlaneseq }
  0x43   :  { %v2900_v29 = vld [vmem:[#allocation2 + $0xe4] ss:$16 sps:$4 sm:$0xff]   ;;  %v2902_v30 = vld [vmem:[#allocation2 + $0xec] ss:$16 sps:$4 sm:$0xff]   ;;  %v2904_v31 = vld [vmem:[#allocation2 + $0xe0] ss:$16 sps:$4 sm:$0xff]  }
  0x44   :  { %v2905_v32 = vld [vmem:[#allocation2 + $0xe8] ss:$16 sps:$4 sm:$0xff]   ;;  %v3347_v33 = vld [vmem:[%s4433_s1] sm:$0xff]   ;;  %v2922_v43 = vld [vmem:[#allocation5 + $0x50] sm:$0xff]  }
  0x45   :  { %424 = vmatpush1.bf16.msra.mxu0 %v2874_v11  ;;  %537 = vmatpush1.bf16.msra.mxu1 %v2875_v12  ;;  %v2914_v34 = vld [vmem:[#allocation5 + $0x40] sm:$0xff]   ;;  %v3352_v39 = vld [vmem:[%s4433_s1 + $0x8] sm:$0xff]   ;;  %v2924_v44 = vld [vmem:[#allocation5 + $0xd0] sm:$0xff]  }
  0x46   :  { %425 = vmatprep.subr.bf16.mxu0 %v2876_v13  ;;  %538 = vmatprep.subr.bf16.mxu1 %v2878_v14  ;;  %v2916_v35 = vld [vmem:[#allocation5 + $0xc0] sm:$0xff]   ;;  %v2920_v40 = vld [vmem:[#allocation5 + $0xc8] sm:$0xff]   ;;  %v2923_v45 = vld [vmem:[#allocation5 + $0x10] sm:$0xff]  }
  0x47   :  { %v2915_v36 = vld [vmem:[#allocation5] sm:$0xff]   ;;  %v2919_v41 = vld [vmem:[#allocation5 + $0x8] sm:$0xff]   ;;  %v2925_v46 = vld [vmem:[#allocation5 + $0x90] sm:$0xff]  }
  0x48   :  { %v2917_v37 = vld [vmem:[#allocation5 + $0x80] sm:$0xff]   ;;  %v2921_v42 = vld [vmem:[#allocation5 + $0x88] sm:$0xff]   ;;  %v2926_v47 = vld [vmem:[#allocation5 + $0x58] sm:$0xff]  }
  0x49   :  { %426 = vmatpush1.bf16.msra.mxu0 %v2880_v15  ;;  %539 = vmatpush1.bf16.msra.mxu1 %v2881_v16  ;;  %v3361_v48 = vld [vmem:[%s4433_s1 + $0x10] sm:$0xff]   ;;  %v2928_v49 = vld [vmem:[#allocation5 + $0xd8] sm:$0xff]   ;;  %v2930_v52 = vld [vmem:[#allocation5 + $0x60] sm:$0xff]  }
  0x4a   :  { %427 = vmatprep.subr.bf16.mxu0 %v2882_v17  ;;  %540 = vmatprep.subr.bf16.mxu1 %v2884_v18  ;;  %v2927_v50 = vld [vmem:[#allocation5 + $0x18] sm:$0xff]   ;;  %v2932_v53 = vld [vmem:[#allocation5 + $0xe0] sm:$0xff]   ;;  %v2934_v56 = vld [vmem:[#allocation5 + $0x68] sm:$0xff]  }
  0x4b   :  { %v2929_v51 = vld [vmem:[#allocation5 + $0x98] sm:$0xff]   ;;  %v2931_v54 = vld [vmem:[#allocation5 + $0x20] sm:$0xff]   ;;  %v2936_v58 = vld [vmem:[#allocation5 + $0xe8] sm:$0xff]  }
  0x4c   :  { %v2933_v55 = vld [vmem:[#allocation5 + $0xa0] sm:$0xff]   ;;  %v3370_v57 = vld [vmem:[%s4433_s1 + $0x18] sm:$0xff]   ;;  %v2935_v59 = vld [vmem:[#allocation5 + $0x28] sm:$0xff]  }
  0x4d   :  { %428 = vmatpush1.bf16.msra.mxu0 %v2886_v19  ;;  %541 = vmatpush1.bf16.msra.mxu1 %v2887_v20  ;;  %v2937_v60 = vld [vmem:[#allocation5 + $0xa8] sm:$0xff]   ;;  %v2938_v61 = vld [vmem:[#allocation5 + $0x70] sm:$0xff]   ;;  %v3383_v2 = vld [vmem:[%s4433_s1 + $0x20] sm:$0xff]  }
  0x4e   :  { %429 = vmatprep.subr.bf16.mxu0 %v2888_v21  ;;  %542 = vmatprep.subr.bf16.mxu1 %v2890_v22  ;;  %v2940_v62 = vld [vmem:[#allocation5 + $0xf0] sm:$0xff]   ;;  %v3392_v3 = vld [vmem:[%s4433_s1 + $0x28] sm:$0xff]   ;;  %v3410_v5 = vld [vmem:[%s4433_s1 + $0x38] sm:$0xff]  }
  0x4f   :  { %v2939_v63 = vld [vmem:[#allocation5 + $0x30] sm:$0xff]   ;;  %v2942_v6 = vld [vmem:[#allocation5 + $0x78] sm:$0xff]   ;;  %v189_v13 = vld [vmem:[%s4436_s4] sm:$0xf] }
  0x50   :  { %v2941_v1 = vld [vmem:[#allocation5 + $0xb0] sm:$0xff]   ;;  %v2944_v7 = vld [vmem:[#allocation5 + $0xf8] sm:$0xff]  }
  0x51   :  { %430 = vmatpush1.bf16.msra.mxu0 %v2892_v23  ;;  %543 = vmatpush1.bf16.msra.mxu1 %v2893_v24  ;;  %v3401_v4 = vld [vmem:[%s4433_s1 + $0x30] sm:$0xff]   ;;  %v2943_v8 = vld [vmem:[#allocation5 + $0x38] sm:$0xff]  }
  0x52   :  { %431 = vmatprep.subr.bf16.mxu0 %v2894_v25  ;;  %544 = vmatprep.subr.bf16.mxu1 %v2896_v26  ;;  %v2945_v9 = vld [vmem:[#allocation5 + $0xb8] sm:$0xff]  }
  0x55   :  { %432 = vmatpush1.bf16.msra.mxu0 %v2898_v27  ;;  %545 = vmatpush1.bf16.msra.mxu1 %v2899_v28 }
  0x56   :  { %433 = vmatprep.subr.bf16.mxu0 %v2900_v29  ;;  %546 = vmatprep.subr.bf16.mxu1 %v2902_v30 }
  0x59   :  { %434 = vmatpush1.bf16.msra.mxu0 %v2904_v31  ;;  %547 = vmatpush1.bf16.msra.mxu1 %v2905_v32 }
  0x5a   :  { %2650 = vmatprep.subr.bf16.mxu0 %v2914_v34  ;;  %2714 = vmatprep.subr.bf16.mxu1 %v2916_v35 }
  0x5c   :  { %452 = vmatmul.mubr.bf16.vlgmr.msra.gmra.mrb[0].mxu0 %v3347_v33  ;;  %565 = vmatmul.mubr.bf16.vlgmr.msra.gmra.mrb[0].mxu1 %v3347_v33 }
  0x5d   :  { %461 = vmatprep.mubr.bf16.mxu0 %v3215_v0  ;;  %574 = vmatprep.mubr.bf16.mxu1 %v3215_v0 }
  0x5e   :  { %2651 = vmatpush3.bf16.msra.mxu0 %v2915_v36  ;;  %2715 = vmatpush3.bf16.msra.mxu1 %v2917_v37 }
  0x5f   :  { %2652 = vmatprep.subr.bf16.mxu0 %v2918_v38  ;;  %2716 = vmatprep.subr.bf16.mxu1 %v2920_v40 }
  0x62   :  { %2653 = vmatpush3.bf16.msra.mxu0 %v2919_v41  ;;  %2717 = vmatpush3.bf16.msra.mxu1 %v2921_v42 }
  0x63   :  { %2654 = vmatprep.subr.bf16.mxu0 %v2922_v43  ;;  %2718 = vmatprep.subr.bf16.mxu1 %v2924_v44 }
  0x64   :  { %462 = vmatmul.mubr.bf16.gmra.mrb[4].mxu0 %v3352_v39  ;;  %575 = vmatmul.mubr.bf16.gmra.mrb[4].mxu1 %v3352_v39 }
  0x65   :  { %471 = vmatprep.mubr.bf16.mxu0 %v3215_v0  ;;  %584 = vmatprep.mubr.bf16.mxu1 %v3215_v0 }
  0x66   :  { %2655 = vmatpush3.bf16.msra.mxu0 %v2923_v45  ;;  %2719 = vmatpush3.bf16.msra.mxu1 %v2925_v46 }
  0x67   :  { %2656 = vmatprep.subr.bf16.mxu0 %v2926_v47  ;;  %2720 = vmatprep.subr.bf16.mxu1 %v2928_v49 }
  0x6a   :  { %2657 = vmatpush3.bf16.msra.mxu0 %v2927_v50  ;;  %2721 = vmatpush3.bf16.msra.mxu1 %v2929_v51 }
  0x6b   :  { %2658 = vmatprep.subr.bf16.mxu0 %v2930_v52  ;;  %2722 = vmatprep.subr.bf16.mxu1 %v2932_v53 }
  0x6c   :  { %472 = vmatmul.mubr.bf16.gmra.mrb[8].mxu0 %v3361_v48  ;;  %585 = vmatmul.mubr.bf16.gmra.mrb[8].mxu1 %v3361_v48 }
  0x6d   :  { %481 = vmatprep.mubr.bf16.mxu0 %v3215_v0  ;;  %594 = vmatprep.mubr.bf16.mxu1 %v3215_v0 }
  0x6e   :  { %2659 = vmatpush3.bf16.msra.mxu0 %v2931_v54  ;;  %2723 = vmatpush3.bf16.msra.mxu1 %v2933_v55 }
  0x6f   :  { %2660 = vmatprep.subr.bf16.mxu0 %v2934_v56  ;;  %2724 = vmatprep.subr.bf16.mxu1 %v2936_v58 }
  0x72   :  { %2661 = vmatpush3.bf16.msra.mxu0 %v2935_v59  ;;  %2725 = vmatpush3.bf16.msra.mxu1 %v2937_v60 }
  0x73   :  { %2662 = vmatprep.subr.bf16.mxu0 %v2938_v61  ;;  %2726 = vmatprep.subr.bf16.mxu1 %v2940_v62 }
  0x74   :  { %482 = vmatmul.mubr.bf16.gmra.mrb[12].mxu0 %v3370_v57  ;;  %595 = vmatmul.mubr.bf16.gmra.mrb[12].mxu1 %v3370_v57 }
  0x75   :  { %491 = vmatprep.mubr.bf16.mxu0 %v3215_v0  ;;  %604 = vmatprep.mubr.bf16.mxu1 %v3215_v0 }
  0x76   :  { %2663 = vmatpush3.bf16.msra.mxu0 %v2939_v63  ;;  %2727 = vmatpush3.bf16.msra.mxu1 %v2941_v1 }
  0x77   :  { %2664 = vmatprep.subr.bf16.mxu0 %v2942_v6  ;;  %2728 = vmatprep.subr.bf16.mxu1 %v2944_v7 }
  0x7a   :  { %2665 = vmatpush3.bf16.msra.mxu0 %v2943_v8  ;;  %2729 = vmatpush3.bf16.msra.mxu1 %v2945_v9 }
  0x7c   :  { %492 = vmatmul.mubr.bf16.gmra.mrb[16].mxu0 %v3383_v2  ;;  %605 = vmatmul.mubr.bf16.gmra.mrb[16].mxu1 %v3383_v2 }
  0x7d   :  { %501 = vmatprep.mubr.bf16.mxu0 %v3215_v0  ;;  %614 = vmatprep.mubr.bf16.mxu1 %v3215_v0 }
  0x84   :  { %502 = vmatmul.mubr.bf16.gmra.mrb[20].mxu0 %v3392_v3  ;;  %615 = vmatmul.mubr.bf16.gmra.mrb[20].mxu1 %v3392_v3 }
  0x85   :  { %511 = vmatprep.mubr.bf16.mxu0 %v3215_v0  ;;  %624 = vmatprep.mubr.bf16.mxu1 %v3215_v0 }
  0x8c   :  { %512 = vmatmul.mubr.bf16.gmra.mrb[24].mxu0 %v3401_v4  ;;  %625 = vmatmul.mubr.bf16.gmra.mrb[24].mxu1 %v3401_v4 }
  0x8d   :  { %521 = vmatprep.mubr.bf16.mxu0 %v3215_v0  ;;  %634 = vmatprep.mubr.bf16.mxu1 %v3215_v0  ;;  %v192_v0 = vshrl.u32 %v191_v10, 7 }
  0x8f   :  { %v193_v11 = vsub.s32 0, %v192_v0  ;;  %v201_v12 = vsub.s32 2, %v192_v0  ;;  %v197_v14 = vsub.s32 1, %v192_v0  ;;  %v205_v15 = vsub.s32 3, %v192_v0 }
  0x91   :  { %v3418_v16 = vrot.slane %v189_v13, %v193_v11  ;;  %v3420_v17 = vrot.slane %v189_v13, %v201_v12  ;;  %v3422_v18 = vrot.slane %v189_v13, %v197_v14  ;;  %v3424_v19 = vrot.slane %v189_v13, %v205_v15 }
  0x94   :  { %522 = vmatmul.mubr.bf16.gmra.mrb[28].mxu0 %v3410_v5  ;;  %635 = vmatmul.mubr.bf16.gmra.mrb[28].mxu1 %v3410_v5 }
 0x12f   :  { %v453_v20 = vpop.f32.mrb[0].mxu0  ;;  %v566_v21 = vpop.f32.mrb[0].mxu1 }
 0x130   :  { %v454_v22 = vadd.f32 %v453_v20, %v3418_v16  ;;  %v567_v23 = vadd.f32 %v566_v21, %v3420_v17  ;;  %v455_v24 = vpop.f32.mrb[1].mxu0  ;;  %v568_v25 = vpop.f32.mrb[1].mxu1 }
 0x131   :  { %v456_v26 = vadd.f32 %v455_v24, %v3422_v18  ;;  %v569_v27 = vadd.f32 %v568_v25, %v3424_v19  ;;  %v457_v28 = vpop.f32.mrb[2].mxu0  ;;  %v570_v29 = vpop.f32.mrb[2].mxu1 }
 0x132   :  { %v647_v30 = vmax.f32 %v567_v23, 0.0  ;;  %v458_v31 = vadd.f32 %v457_v28, %v3418_v16  ;;  %v571_v32 = vadd.f32 %v570_v29, %v3420_v17  ;;  %v459_v34 = vpop.f32.mrb[3].mxu0  ;;  %v572_v35 = vpop.f32.mrb[3].mxu1  ;;  %v645_v40 = vmax.f32 %v454_v22, 0.0 }
 0x133   :  { %v648_v36 = vmax.f32 %v569_v27, 0.0  ;;  %v460_v37 = vadd.f32 %v459_v34, %v3422_v18  ;;  %v573_v38 = vadd.f32 %v572_v35, %v3424_v19  ;;  %v646_v43 = vmax.f32 %v456_v26, 0.0 }
 0x134   :  { %v649_v41 = vmax.f32 %v458_v31, 0.0  ;;  %v651_v42 = vmax.f32 %v571_v32, 0.0 }
 0x135   :  { %v650_v44 = vmax.f32 %v460_v37, 0.0  ;;  %v652_v45 = vmax.f32 %v573_v38, 0.0 }
 0x136   :  { %v709_v46 = vpack.c.bf16 %v649_v41, %v645_v40  ;;  %v711_v47 = vpack.c.bf16 %v651_v42, %v647_v30 }
 0x137   :  { %v710_v49 = vpack.c.bf16 %v650_v44, %v646_v43  ;;  %v712_v50 = vpack.c.bf16 %v652_v45, %v648_v36  ;;  %v463_v51 = vpop.f32.mrb[4].mxu0  ;;  %v576_v52 = vpop.f32.mrb[4].mxu1 }
 0x138   :  { %v464_v53 = vadd.f32 %v463_v51, %v3418_v16  ;;  %v577_v54 = vadd.f32 %v576_v52, %v3420_v17  ;;  %v465_v55 = vpop.f32.mrb[5].mxu0  ;;  %v578_v56 = vpop.f32.mrb[5].mxu1 }
 0x139   :  { %v466_v58 = vadd.f32 %v465_v55, %v3422_v18  ;;  %v579_v59 = vadd.f32 %v578_v56, %v3424_v19  ;;  %v467_v60 = vpop.f32.mrb[6].mxu0  ;;  %v580_v61 = vpop.f32.mrb[6].mxu1  ;;  %1036 = vmatprep.mubr.bf16.mxu0 %v710_v49  ;;  %1133 = vmatprep.mubr.bf16.mxu1 %v712_v50 }
 0x13a   :  { %v655_v62 = vmax.f32 %v577_v54, 0.0  ;;  %v468_v63 = vadd.f32 %v467_v60, %v3418_v16  ;;  %v581_v1 = vadd.f32 %v580_v61, %v3420_v17  ;;  %v469_v6 = vpop.f32.mrb[7].mxu0  ;;  %v582_v7 = vpop.f32.mrb[7].mxu1  ;;  %1037 = vmatmul.mubr.bf16.vlgmr.msra.gmra.mrb[32].mxu0 %v709_v46  ;;  %1134 = vmatmul.mubr.bf16.vlgmr.msra.gmra.mrb[32].mxu1 %v711_v47  ;;  %v653_v11 = vmax.f32 %v464_v53, 0.0 }
 0x13b   :  { %v656_v8 = vmax.f32 %v579_v59, 0.0  ;;  %v470_v9 = vadd.f32 %v469_v6, %v3422_v18  ;;  %v583_v0 = vadd.f32 %v582_v7, %v3424_v19  ;;  %v654_v14 = vmax.f32 %v466_v58, 0.0 }
 0x13c   :  { %v657_v12 = vmax.f32 %v468_v63, 0.0  ;;  %v659_v13 = vmax.f32 %v581_v1, 0.0 }
 0x13d   :  { %v658_v15 = vmax.f32 %v470_v9, 0.0  ;;  %v660_v20 = vmax.f32 %v583_v0, 0.0 }
 0x13e   :  { %v713_v21 = vpack.c.bf16 %v657_v12, %v653_v11  ;;  %v715_v22 = vpack.c.bf16 %v659_v13, %v655_v62 }
 0x13f   :  { %v714_v23 = vpack.c.bf16 %v658_v15, %v654_v14  ;;  %v716_v24 = vpack.c.bf16 %v660_v20, %v656_v8  ;;  %v473_v25 = vpop.f32.mrb[8].mxu0  ;;  %v586_v26 = vpop.f32.mrb[8].mxu1 }
 0x140   :  { %v474_v27 = vadd.f32 %v473_v25, %v3418_v16  ;;  %v587_v28 = vadd.f32 %v586_v26, %v3420_v17  ;;  %v475_v29 = vpop.f32.mrb[9].mxu0  ;;  %v588_v30 = vpop.f32.mrb[9].mxu1 }
 0x141   :  { %v476_v31 = vadd.f32 %v475_v29, %v3422_v18  ;;  %v589_v32 = vadd.f32 %v588_v30, %v3424_v19  ;;  %v477_v34 = vpop.f32.mrb[10].mxu0  ;;  %v590_v35 = vpop.f32.mrb[10].mxu1  ;;  %1044 = vmatprep.mubr.bf16.mxu0 %v714_v23  ;;  %1141 = vmatprep.mubr.bf16.mxu1 %v716_v24 }
 0x142   :  { %v663_v36 = vmax.f32 %v587_v28, 0.0  ;;  %v478_v37 = vadd.f32 %v477_v34, %v3418_v16  ;;  %v591_v38 = vadd.f32 %v590_v35, %v3420_v17  ;;  %v479_v40 = vpop.f32.mrb[11].mxu0  ;;  %v592_v41 = vpop.f32.mrb[11].mxu1  ;;  %1045 = vmatmul.mubr.bf16.gmra.mrb[36].mxu0 %v713_v21  ;;  %1142 = vmatmul.mubr.bf16.gmra.mrb[36].mxu1 %v715_v22  ;;  %v661_v45 = vmax.f32 %v474_v27, 0.0 }
 0x143   :  { %v664_v42 = vmax.f32 %v589_v32, 0.0  ;;  %v480_v43 = vadd.f32 %v479_v40, %v3422_v18  ;;  %v593_v44 = vadd.f32 %v592_v41, %v3424_v19  ;;  %v662_v49 = vmax.f32 %v476_v31, 0.0 }
 0x144   :  { %v665_v46 = vmax.f32 %v478_v37, 0.0  ;;  %v667_v47 = vmax.f32 %v591_v38, 0.0 }
 0x145   :  { %v666_v50 = vmax.f32 %v480_v43, 0.0  ;;  %v668_v51 = vmax.f32 %v593_v44, 0.0 }
 0x146   :  { %v717_v52 = vpack.c.bf16 %v665_v46, %v661_v45  ;;  %v719_v53 = vpack.c.bf16 %v667_v47, %v663_v36 }
 0x147   :  { %v718_v54 = vpack.c.bf16 %v666_v50, %v662_v49  ;;  %v720_v55 = vpack.c.bf16 %v668_v51, %v664_v42  ;;  %v483_v56 = vpop.f32.mrb[12].mxu0  ;;  %v596_v58 = vpop.f32.mrb[12].mxu1 }
 0x148   :  { %v484_v59 = vadd.f32 %v483_v56, %v3418_v16  ;;  %v597_v60 = vadd.f32 %v596_v58, %v3420_v17  ;;  %v485_v61 = vpop.f32.mrb[13].mxu0  ;;  %v598_v62 = vpop.f32.mrb[13].mxu1 }
 0x149   :  { %v486_v63 = vadd.f32 %v485_v61, %v3422_v18  ;;  %v599_v1 = vadd.f32 %v598_v62, %v3424_v19  ;;  %v487_v6 = vpop.f32.mrb[14].mxu0  ;;  %v600_v7 = vpop.f32.mrb[14].mxu1  ;;  %1052 = vmatprep.mubr.bf16.mxu0 %v718_v54  ;;  %1149 = vmatprep.mubr.bf16.mxu1 %v720_v55 }
 0x14a   :  { %v671_v8 = vmax.f32 %v597_v60, 0.0  ;;  %v488_v9 = vadd.f32 %v487_v6, %v3418_v16  ;;  %v601_v0 = vadd.f32 %v600_v7, %v3420_v17  ;;  %v489_v11 = vpop.f32.mrb[15].mxu0  ;;  %v602_v12 = vpop.f32.mrb[15].mxu1  ;;  %1053 = vmatmul.mubr.bf16.gmra.mrb[40].mxu0 %v717_v52  ;;  %1150 = vmatmul.mubr.bf16.gmra.mrb[40].mxu1 %v719_v53  ;;  %v669_v20 = vmax.f32 %v484_v59, 0.0 }
 0x14b   :  { %v672_v13 = vmax.f32 %v599_v1, 0.0  ;;  %v490_v14 = vadd.f32 %v489_v11, %v3422_v18  ;;  %v603_v15 = vadd.f32 %v602_v12, %v3424_v19  ;;  %v670_v23 = vmax.f32 %v486_v63, 0.0 }
 0x14c   :  { %v673_v21 = vmax.f32 %v488_v9, 0.0  ;;  %v675_v22 = vmax.f32 %v601_v0, 0.0 }
 0x14d   :  { %v674_v24 = vmax.f32 %v490_v14, 0.0  ;;  %v676_v25 = vmax.f32 %v603_v15, 0.0 }
 0x14e   :  { %v721_v26 = vpack.c.bf16 %v673_v21, %v669_v20  ;;  %v723_v27 = vpack.c.bf16 %v675_v22, %v671_v8 }
 0x14f   :  { %v722_v28 = vpack.c.bf16 %v674_v24, %v670_v23  ;;  %v724_v29 = vpack.c.bf16 %v676_v25, %v672_v13  ;;  %v493_v30 = vpop.f32.mrb[16].mxu0  ;;  %v606_v31 = vpop.f32.mrb[16].mxu1 }
 0x150   :  { %v494_v32 = vadd.f32 %v493_v30, %v3418_v16  ;;  %v607_v34 = vadd.f32 %v606_v31, %v3420_v17  ;;  %v495_v35 = vpop.f32.mrb[17].mxu0  ;;  %v608_v36 = vpop.f32.mrb[17].mxu1 }
 0x151   :  { %v496_v37 = vadd.f32 %v495_v35, %v3422_v18  ;;  %v609_v38 = vadd.f32 %v608_v36, %v3424_v19  ;;  %v497_v40 = vpop.f32.mrb[18].mxu0  ;;  %v610_v41 = vpop.f32.mrb[18].mxu1  ;;  %1060 = vmatprep.mubr.bf16.mxu0 %v722_v28  ;;  %1157 = vmatprep.mubr.bf16.mxu1 %v724_v29 }
 0x152   :  { %v679_v42 = vmax.f32 %v607_v34, 0.0  ;;  %v498_v43 = vadd.f32 %v497_v40, %v3418_v16  ;;  %v611_v44 = vadd.f32 %v610_v41, %v3420_v17  ;;  %v499_v45 = vpop.f32.mrb[19].mxu0  ;;  %v612_v46 = vpop.f32.mrb[19].mxu1  ;;  %1061 = vmatmul.mubr.bf16.gmra.mrb[44].mxu0 %v721_v26  ;;  %1158 = vmatmul.mubr.bf16.gmra.mrb[44].mxu1 %v723_v27  ;;  %v677_v51 = vmax.f32 %v494_v32, 0.0 }
 0x153   :  { %v680_v47 = vmax.f32 %v609_v38, 0.0  ;;  %v500_v49 = vadd.f32 %v499_v45, %v3422_v18  ;;  %v613_v50 = vadd.f32 %v612_v46, %v3424_v19  ;;  %v678_v54 = vmax.f32 %v496_v37, 0.0 }
 0x154   :  { %v681_v52 = vmax.f32 %v498_v43, 0.0  ;;  %v683_v53 = vmax.f32 %v611_v44, 0.0 }
 0x155   :  { %v682_v55 = vmax.f32 %v500_v49, 0.0  ;;  %v684_v56 = vmax.f32 %v613_v50, 0.0 }
 0x156   :  { %v725_v58 = vpack.c.bf16 %v681_v52, %v677_v51  ;;  %v727_v59 = vpack.c.bf16 %v683_v53, %v679_v42 }
 0x157   :  { %v726_v60 = vpack.c.bf16 %v682_v55, %v678_v54  ;;  %v728_v61 = vpack.c.bf16 %v684_v56, %v680_v47  ;;  %v503_v62 = vpop.f32.mrb[20].mxu0  ;;  %v616_v63 = vpop.f32.mrb[20].mxu1 }
 0x158   :  { %v504_v1 = vadd.f32 %v503_v62, %v3418_v16  ;;  %v617_v6 = vadd.f32 %v616_v63, %v3420_v17  ;;  %v505_v7 = vpop.f32.mrb[21].mxu0  ;;  %v618_v8 = vpop.f32.mrb[21].mxu1 }
 0x159   :  { %v506_v9 = vadd.f32 %v505_v7, %v3422_v18  ;;  %v619_v0 = vadd.f32 %v618_v8, %v3424_v19  ;;  %v507_v11 = vpop.f32.mrb[22].mxu0  ;;  %v620_v12 = vpop.f32.mrb[22].mxu1  ;;  %1068 = vmatprep.mubr.bf16.mxu0 %v726_v60  ;;  %1165 = vmatprep.mubr.bf16.mxu1 %v728_v61 }
 0x15a   :  { %v687_v13 = vmax.f32 %v617_v6, 0.0  ;;  %v508_v14 = vadd.f32 %v507_v11, %v3418_v16  ;;  %v621_v15 = vadd.f32 %v620_v12, %v3420_v17  ;;  %v509_v20 = vpop.f32.mrb[23].mxu0  ;;  %v622_v21 = vpop.f32.mrb[23].mxu1  ;;  %1069 = vmatmul.mubr.bf16.gmra.mrb[48].mxu0 %v725_v58  ;;  %1166 = vmatmul.mubr.bf16.gmra.mrb[48].mxu1 %v727_v59  ;;  %v685_v25 = vmax.f32 %v504_v1, 0.0 }
 0x15b   :  { %v688_v22 = vmax.f32 %v619_v0, 0.0  ;;  %v510_v23 = vadd.f32 %v509_v20, %v3422_v18  ;;  %v623_v24 = vadd.f32 %v622_v21, %v3424_v19  ;;  %v686_v28 = vmax.f32 %v506_v9, 0.0 }
 0x15c   :  { %v689_v26 = vmax.f32 %v508_v14, 0.0  ;;  %v691_v27 = vmax.f32 %v621_v15, 0.0 }
 0x15d   :  { %v690_v29 = vmax.f32 %v510_v23, 0.0  ;;  %v692_v30 = vmax.f32 %v623_v24, 0.0 }
 0x15e   :  { %v729_v31 = vpack.c.bf16 %v689_v26, %v685_v25  ;;  %v731_v32 = vpack.c.bf16 %v691_v27, %v687_v13 }
 0x15f   :  { %v730_v34 = vpack.c.bf16 %v690_v29, %v686_v28  ;;  %v732_v35 = vpack.c.bf16 %v692_v30, %v688_v22  ;;  %v513_v36 = vpop.f32.mrb[24].mxu0  ;;  %v626_v37 = vpop.f32.mrb[24].mxu1 }
 0x160   :  { %v514_v38 = vadd.f32 %v513_v36, %v3418_v16  ;;  %v627_v40 = vadd.f32 %v626_v37, %v3420_v17  ;;  %v515_v41 = vpop.f32.mrb[25].mxu0  ;;  %v628_v42 = vpop.f32.mrb[25].mxu1 }
 0x161   :  { %v516_v43 = vadd.f32 %v515_v41, %v3422_v18  ;;  %v629_v44 = vadd.f32 %v628_v42, %v3424_v19  ;;  %v517_v45 = vpop.f32.mrb[26].mxu0  ;;  %v630_v46 = vpop.f32.mrb[26].mxu1  ;;  %1076 = vmatprep.mubr.bf16.mxu0 %v730_v34  ;;  %1173 = vmatprep.mubr.bf16.mxu1 %v732_v35 }
 0x162   :  { %v695_v47 = vmax.f32 %v627_v40, 0.0  ;;  %v518_v49 = vadd.f32 %v517_v45, %v3418_v16  ;;  %v631_v50 = vadd.f32 %v630_v46, %v3420_v17  ;;  %v519_v51 = vpop.f32.mrb[27].mxu0  ;;  %v632_v52 = vpop.f32.mrb[27].mxu1  ;;  %1077 = vmatmul.mubr.bf16.gmra.mrb[52].mxu0 %v729_v31  ;;  %1174 = vmatmul.mubr.bf16.gmra.mrb[52].mxu1 %v731_v32  ;;  %v693_v56 = vmax.f32 %v514_v38, 0.0 }
 0x163   :  { %v696_v53 = vmax.f32 %v629_v44, 0.0  ;;  %v520_v54 = vadd.f32 %v519_v51, %v3422_v18  ;;  %v633_v55 = vadd.f32 %v632_v52, %v3424_v19  ;;  %v694_v60 = vmax.f32 %v516_v43, 0.0 }
 0x164   :  { %v697_v58 = vmax.f32 %v518_v49, 0.0  ;;  %v699_v59 = vmax.f32 %v631_v50, 0.0 }
 0x165   :  { %v698_v61 = vmax.f32 %v520_v54, 0.0  ;;  %v700_v62 = vmax.f32 %v633_v55, 0.0 }
 0x166   :  { %v733_v63 = vpack.c.bf16 %v697_v58, %v693_v56  ;;  %v735_v1 = vpack.c.bf16 %v699_v59, %v695_v47 }
 0x167   :  { %v734_v6 = vpack.c.bf16 %v698_v61, %v694_v60  ;;  %v736_v7 = vpack.c.bf16 %v700_v62, %v696_v53  ;;  %v523_v8 = vpop.f32.mrb[28].mxu0  ;;  %v636_v9 = vpop.f32.mrb[28].mxu1  ;;  %v141_v53 = vunpack.c.l.bf16 %v3347_v33  ;;  %v142_v61 = vunpack.c.h.bf16 %v3347_v33 }
 0x168   :  { %v524_v0 = vadd.f32 %v523_v8, %v3418_v16  ;;  %v637_v11 = vadd.f32 %v636_v9, %v3420_v17  ;;  %v525_v12 = vpop.f32.mrb[29].mxu0  ;;  %v638_v13 = vpop.f32.mrb[29].mxu1 }
 0x169   :  { %v526_v14 = vadd.f32 %v525_v12, %v3422_v18  ;;  %v639_v15 = vadd.f32 %v638_v13, %v3424_v19  ;;  %v527_v20 = vpop.f32.mrb[30].mxu0  ;;  %v640_v21 = vpop.f32.mrb[30].mxu1  ;;  %1084 = vmatprep.mubr.bf16.mxu0 %v734_v6  ;;  %1181 = vmatprep.mubr.bf16.mxu1 %v736_v7 }
 0x16a   :  { %v703_v22 = vmax.f32 %v637_v11, 0.0  ;;  %v528_v23 = vadd.f32 %v527_v20, %v3418_v16  ;;  %v641_v24 = vadd.f32 %v640_v21, %v3420_v17  ;;  %v529_v25 = vpop.f32.mrb[31].mxu0  ;;  %v642_v26 = vpop.f32.mrb[31].mxu1  ;;  %1085 = vmatmul.mubr.bf16.gmra.mrb[56].mxu0 %v733_v63  ;;  %1182 = vmatmul.mubr.bf16.gmra.mrb[56].mxu1 %v735_v1  ;;  %v701_v30 = vmax.f32 %v524_v0, 0.0 }
 0x16b   :  { %v704_v27 = vmax.f32 %v639_v15, 0.0  ;;  %v530_v28 = vadd.f32 %v529_v25, %v3422_v18  ;;  %v643_v29 = vadd.f32 %v642_v26, %v3424_v19  ;;  %v702_v34 = vmax.f32 %v526_v14, 0.0  ;;  %v3493_v18 = vld [vmem:[%s4438_s6] ss:$0 sm:$0xff] }
 0x16c   :  { %v705_v31 = vmax.f32 %v528_v23, 0.0  ;;  %v707_v32 = vmax.f32 %v641_v24, 0.0  ;;  %v143_v11 = vunpack.c.l.bf16 %v3352_v39  ;;  %v144_v25 = vunpack.c.h.bf16 %v3352_v39 }
 0x16d   :  { %v706_v35 = vmax.f32 %v530_v28, 0.0  ;;  %v708_v36 = vmax.f32 %v643_v29, 0.0 }
 0x16e   :  { %v737_v37 = vpack.c.bf16 %v705_v31, %v701_v30  ;;  %v739_v38 = vpack.c.bf16 %v707_v32, %v703_v22 }
 0x16f   :  { %v738_v16 = vpack.c.bf16 %v706_v35, %v702_v34  ;;  %v740_v40 = vpack.c.bf16 %v708_v36, %v704_v27  ;;  %v145_v35 = vunpack.c.l.bf16 %v3361_v48 }
 0x171   :  { %1092 = vmatprep.mubr.bf16.mxu0 %v738_v16  ;;  %1189 = vmatprep.mubr.bf16.mxu1 %v740_v40 }
 0x172   :  { %1093 = vmatmul.mubr.bf16.gmra.mrb[60].mxu0 %v737_v37  ;;  %1190 = vmatmul.mubr.bf16.gmra.mrb[60].mxu1 %v739_v38 }
 0x20d   :  { %v2666_v17 = vpop.f32.mrb[32].mxu0  ;;  %v2730_v41 = vpop.f32.mrb[32].mxu1 }
 0x20e   :  { %v2667_v19 = vpop.f32.mrb[33].mxu0  ;;  %v2731_v42 = vpop.f32.mrb[33].mxu1 }
 0x20f   :  { %v2668_v43 = vadd.f32 %v2667_v19, %v2666_v17  ;;  %v2732_v44 = vadd.f32 %v2731_v42, %v2730_v41  ;;  %v2669_v45 = vpop.f32.mrb[34].mxu0  ;;  %v2733_v46 = vpop.f32.mrb[34].mxu1  ;;  %v146_v17 = vunpack.c.h.bf16 %v3361_v48 }
 0x210   :  { %v2670_v47 = vpop.f32.mrb[35].mxu0  ;;  %v2734_v49 = vpop.f32.mrb[35].mxu1 }
 0x211   :  { %v1039_v50 = vadd.f32 %v2668_v43, %v3493_v18  ;;  %v2671_v51 = vadd.f32 %v2670_v47, %v2669_v45  ;;  %v2735_v52 = vadd.f32 %v2734_v49, %v2733_v46 }
 0x213   :  { %v1136_v54 = vadd.f32 %v2732_v44, %v1039_v50  ;;  %v1042_v55 = vadd.f32 %v2671_v51, %v3493_v18 }
 0x215   :  { %v1139_v56 = vadd.f32 %v2735_v52, %v1042_v55  ;;  %v2672_v58 = vpop.f32.mrb[36].mxu0  ;;  %v2736_v59 = vpop.f32.mrb[36].mxu1  ;;  %v3498_v60 = vadd.f32 %v1136_v54, %v141_v53 }
 0x216   :  { %v2673_v62 = vpop.f32.mrb[37].mxu0  ;;  %v2737_v63 = vpop.f32.mrb[37].mxu1 }
 0x217   :  { %v2674_v1 = vadd.f32 %v2673_v62, %v2672_v58  ;;  %v2738_v6 = vadd.f32 %v2737_v63, %v2736_v59  ;;  %v2675_v7 = vpop.f32.mrb[38].mxu0  ;;  %v2739_v8 = vpop.f32.mrb[38].mxu1  ;;  %1216 = vadd.xlane.f32.xlu0 %v3498_v60  ;;  %v3504_v15 = vadd.f32 %v1139_v56, %v142_v61  ;;  %v147_v56 = vunpack.c.l.bf16 %v3370_v57 }
 0x218   :  { %v2676_v9 = vpop.f32.mrb[39].mxu0  ;;  %v2740_v0 = vpop.f32.mrb[39].mxu1  ;;  %v148_v61 = vunpack.c.h.bf16 %v3370_v57 }
 0x219   :  { %v1047_v12 = vadd.f32 %v2674_v1, %v3493_v18  ;;  %v2677_v13 = vadd.f32 %v2676_v9, %v2675_v7  ;;  %v2741_v14 = vadd.f32 %v2740_v0, %v2739_v8 }
 0x21b   :  { %v1144_v20 = vadd.f32 %v2738_v6, %v1047_v12  ;;  %v1050_v33 = vadd.f32 %v2677_v13, %v3493_v18  ;;  %1218 = vadd.xlane.f32.xlu0 %v3504_v15 }
 0x21d   :  { %v1147_v21 = vadd.f32 %v2741_v14, %v1050_v33  ;;  %v2678_v22 = vpop.f32.mrb[40].mxu0  ;;  %v2742_v23 = vpop.f32.mrb[40].mxu1  ;;  %v3508_v24 = vadd.f32 %v1144_v20, %v143_v11 }
 0x21e   :  { %v2679_v26 = vpop.f32.mrb[41].mxu0  ;;  %v2743_v27 = vpop.f32.mrb[41].mxu1 }
 0x21f   :  { %v2680_v28 = vadd.f32 %v2679_v26, %v2678_v22  ;;  %v2744_v29 = vadd.f32 %v2743_v27, %v2742_v23  ;;  %v2681_v30 = vpop.f32.mrb[42].mxu0  ;;  %v2745_v31 = vpop.f32.mrb[42].mxu1  ;;  %1220 = vadd.xlane.f32.xlu1 %v3508_v24  ;;  %v3514_v16 = vadd.f32 %v1147_v21, %v144_v25  ;;  %v149_v22 = vunpack.c.l.bf16 %v3383_v2 }
 0x220   :  { %v2682_v32 = vpop.f32.mrb[43].mxu0  ;;  %v2746_v34 = vpop.f32.mrb[43].mxu1  ;;  %v150_v26 = vunpack.c.h.bf16 %v3383_v2 }
 0x221   :  { %v1055_v36 = vadd.f32 %v2680_v28, %v3493_v18  ;;  %v2683_v37 = vadd.f32 %v2682_v32, %v2681_v30  ;;  %v2747_v38 = vadd.f32 %v2746_v34, %v2745_v31 }
 0x223   :  { %v1152_v40 = vadd.f32 %v2744_v29, %v1055_v36  ;;  %v1058_v39 = vadd.f32 %v2683_v37, %v3493_v18  ;;  %1222 = vadd.xlane.f32.xlu1 %v3514_v16 }
 0x225   :  { %v1155_v41 = vadd.f32 %v2747_v38, %v1058_v39  ;;  %v2684_v19 = vpop.f32.mrb[44].mxu0  ;;  %v2748_v42 = vpop.f32.mrb[44].mxu1  ;;  %v3519_v43 = vadd.f32 %v1152_v40, %v145_v35 }
 0x226   :  { %v2685_v44 = vpop.f32.mrb[45].mxu0  ;;  %v2749_v45 = vpop.f32.mrb[45].mxu1 }
 0x227   :  { %v2686_v46 = vadd.f32 %v2685_v44, %v2684_v19  ;;  %v2750_v47 = vadd.f32 %v2749_v45, %v2748_v42  ;;  %v2687_v49 = vpop.f32.mrb[46].mxu0  ;;  %v2751_v50 = vpop.f32.mrb[46].mxu1  ;;  %1224 = vadd.xlane.f32.xlu0 %v3519_v43  ;;  %v3522_v51 = vadd.f32 %v1155_v41, %v146_v17  ;;  %v151_v19 = vunpack.c.l.bf16 %v3392_v3 }
 0x228   :  { %v2688_v52 = vpop.f32.mrb[47].mxu0  ;;  %v2752_v53 = vpop.f32.mrb[47].mxu1  ;;  %v152_v45 = vunpack.c.h.bf16 %v3392_v3 }
 0x229   :  { %v1063_v54 = vadd.f32 %v2686_v46, %v3493_v18  ;;  %v2689_v48 = vadd.f32 %v2688_v52, %v2687_v49  ;;  %v2753_v55 = vadd.f32 %v2752_v53, %v2751_v50  ;;  %1226 = vadd.xlane.f32.xlu1 %v3522_v51 }
 0x22b   :  { %v1160_v58 = vadd.f32 %v2750_v47, %v1063_v54  ;;  %v1066_v59 = vadd.f32 %v2689_v48, %v3493_v18 }
 0x22d   :  { %v1163_v62 = vadd.f32 %v2753_v55, %v1066_v59  ;;  %v2690_v63 = vpop.f32.mrb[48].mxu0  ;;  %v2754_v1 = vpop.f32.mrb[48].mxu1  ;;  %v3529_v6 = vadd.f32 %v1160_v58, %v147_v56 }
 0x22e   :  { %v2691_v7 = vpop.f32.mrb[49].mxu0  ;;  %v2755_v8 = vpop.f32.mrb[49].mxu1 }
 0x22f   :  { %v2692_v9 = vadd.f32 %v2691_v7, %v2690_v63  ;;  %v2756_v0 = vadd.f32 %v2755_v8, %v2754_v1  ;;  %v2693_v11 = vpop.f32.mrb[50].mxu0  ;;  %v2757_v12 = vpop.f32.mrb[50].mxu1  ;;  %1228 = vadd.xlane.f32.xlu0 %v3529_v6  ;;  %v3532_v13 = vadd.f32 %v1163_v62, %v148_v61  ;;  %v153_v1 = vunpack.c.l.bf16 %v3401_v4 }
 0x230   :  { %v2694_v14 = vpop.f32.mrb[51].mxu0  ;;  %v2758_v20 = vpop.f32.mrb[51].mxu1 }
 0x231   :  { %v1071_v33 = vadd.f32 %v2692_v9, %v3493_v18  ;;  %v2695_v57 = vadd.f32 %v2694_v14, %v2693_v11  ;;  %v2759_v21 = vadd.f32 %v2758_v20, %v2757_v12  ;;  %1230 = vadd.xlane.f32.xlu1 %v3532_v13  ;;  %v154_v9 = vunpack.c.h.bf16 %v3401_v4 }
 0x233   :  { %v1168_v23 = vadd.f32 %v2756_v0, %v1071_v33  ;;  %v1074_v25 = vadd.f32 %v2695_v57, %v3493_v18 }
 0x235   :  { %v1171_v27 = vadd.f32 %v2759_v21, %v1074_v25  ;;  %v2696_v28 = vpop.f32.mrb[52].mxu0  ;;  %v2760_v29 = vpop.f32.mrb[52].mxu1  ;;  %v3539_v30 = vadd.f32 %v1168_v23, %v149_v22 }
 0x236   :  { %v2697_v31 = vpop.f32.mrb[53].mxu0  ;;  %v2761_v32 = vpop.f32.mrb[53].mxu1 }
 0x237   :  { %v2698_v34 = vadd.f32 %v2697_v31, %v2696_v28  ;;  %v2762_v35 = vadd.f32 %v2761_v32, %v2760_v29  ;;  %v2699_v36 = vpop.f32.mrb[54].mxu0  ;;  %v2763_v37 = vpop.f32.mrb[54].mxu1  ;;  %1232 = vadd.xlane.f32.xlu0 %v3539_v30  ;;  %v3542_v38 = vadd.f32 %v1171_v27, %v150_v26  ;;  %v155_v31 = vunpack.c.l.bf16 %v3410_v5 }
 0x238   :  { %v2700_v40 = vpop.f32.mrb[55].mxu0  ;;  %v2764_v39 = vpop.f32.mrb[55].mxu1 }
 0x239   :  { %v1079_v17 = vadd.f32 %v2698_v34, %v3493_v18  ;;  %v2701_v2 = vadd.f32 %v2700_v40, %v2699_v36  ;;  %v2765_v41 = vadd.f32 %v2764_v39, %v2763_v37  ;;  %1234 = vadd.xlane.f32.xlu1 %v3542_v38 }
 0x23b   :  { %v1176_v42 = vadd.f32 %v2762_v35, %v1079_v17  ;;  %v1082_v44 = vadd.f32 %v2701_v2, %v3493_v18  ;;  %v156_v35 = vunpack.c.h.bf16 %v3410_v5 }
 0x23d   :  { %v1179_v46 = vadd.f32 %v2765_v41, %v1082_v44  ;;  %v2702_v47 = vpop.f32.mrb[56].mxu0  ;;  %v2766_v49 = vpop.f32.mrb[56].mxu1  ;;  %v3549_v50 = vadd.f32 %v1176_v42, %v151_v19 }
 0x23e   :  { %v2703_v52 = vpop.f32.mrb[57].mxu0  ;;  %v2767_v53 = vpop.f32.mrb[57].mxu1 }
 0x23f   :  { %v2704_v54 = vadd.f32 %v2703_v52, %v2702_v47  ;;  %v2768_v48 = vadd.f32 %v2767_v53, %v2766_v49  ;;  %v2705_v55 = vpop.f32.mrb[58].mxu0  ;;  %v2769_v56 = vpop.f32.mrb[58].mxu1  ;;  %1236 = vadd.xlane.f32.xlu0 %v3549_v50  ;;  %v3552_v58 = vadd.f32 %v1179_v46, %v152_v45 }
 0x240   :  { %v2706_v59 = vpop.f32.mrb[59].mxu0  ;;  %v2770_v61 = vpop.f32.mrb[59].mxu1 }
 0x241   :  { %v1087_v62 = vadd.f32 %v2704_v54, %v3493_v18  ;;  %v2707_v3 = vadd.f32 %v2706_v59, %v2705_v55  ;;  %v2771_v63 = vadd.f32 %v2770_v61, %v2769_v56  ;;  %1238 = vadd.xlane.f32.xlu1 %v3552_v58 }
 0x243   :  { %v1184_v7 = vadd.f32 %v2768_v48, %v1087_v62  ;;  %v1090_v8 = vadd.f32 %v2707_v3, %v3493_v18 }
 0x245   :  { %v1187_v0 = vadd.f32 %v2771_v63, %v1090_v8  ;;  %v2708_v11 = vpop.f32.mrb[60].mxu0  ;;  %v2772_v12 = vpop.f32.mrb[60].mxu1  ;;  %v3559_v14 = vadd.f32 %v1184_v7, %v153_v1 }
 0x246   :  { %v2709_v20 = vpop.f32.mrb[61].mxu0  ;;  %v2773_v33 = vpop.f32.mrb[61].mxu1 }
 0x247   :  { %v2710_v57 = vadd.f32 %v2709_v20, %v2708_v11  ;;  %v2774_v21 = vadd.f32 %v2773_v33, %v2772_v12  ;;  %v2711_v22 = vpop.f32.mrb[62].mxu0  ;;  %v2775_v23 = vpop.f32.mrb[62].mxu1  ;;  %1240 = vadd.xlane.f32.xlu0 %v3559_v14  ;;  %v3562_v25 = vadd.f32 %v1187_v0, %v154_v9 }
 0x248   :  { %v2712_v26 = vpop.f32.mrb[63].mxu0  ;;  %v2776_v27 = vpop.f32.mrb[63].mxu1 }
 0x249   :  { %v1095_v28 = vadd.f32 %v2710_v57, %v3493_v18  ;;  %v2713_v4 = vadd.f32 %v2712_v26, %v2711_v22  ;;  %v2777_v29 = vadd.f32 %v2776_v27, %v2775_v23  ;;  %1242 = vadd.xlane.f32.xlu1 %v3562_v25 }
 0x24b   :  { %v1192_v32 = vadd.f32 %v2774_v21, %v1095_v28  ;;  %v1098_v34 = vadd.f32 %v2713_v4, %v3493_v18 }
 0x24d   :  { %v1195_v36 = vadd.f32 %v2777_v29, %v1098_v34  ;;  %v3569_v37 = vadd.f32 %v1192_v32, %v155_v31 }
 0x24f   :  { %1244 = vadd.xlane.f32.xlu0 %v3569_v37  ;;  %v3572_v40 = vadd.f32 %v1195_v36, %v156_v35 }
 0x251   :  { %1246 = vadd.xlane.f32.xlu1 %v3572_v40 }
 0x2a4   :  { %v1217_v39 = vpop.xlane.xlu0 %1216 }
 0x2a5   :  { %v1249_v17 = vmul.f32 0.0078125, %v1217_v39 }
 0x2a7   :  { %v3576_v2 = vsub.f32 %v3498_v60, %v1249_v17 }
 0x2a8   :  { %v1219_v41 = vpop.xlane.xlu0 %1218 }
 0x2a9   :  { %v1250_v19 = vmul.f32 0.0078125, %v1219_v41  ;;  %v1281_v18 = vmul.f32 %v3576_v2, %v3576_v2 }
 0x2ab   :  { %1297 = vadd.xlane.f32.xlu0 %v1281_v18  ;;  %v3581_v5 = vsub.f32 %v3504_v15, %v1250_v19 }
 0x2ac   :  { %v1221_v42 = vpop.xlane.xlu1 %1220 }
 0x2ad   :  { %v1251_v44 = vmul.f32 0.0078125, %v1221_v42  ;;  %v1282_v45 = vmul.f32 %v3581_v5, %v3581_v5 }
 0x2af   :  { %1299 = vadd.xlane.f32.xlu1 %v1282_v45  ;;  %v3586_v46 = vsub.f32 %v3508_v24, %v1251_v44 }
 0x2b0   :  { %v1223_v60 = vpop.xlane.xlu1 %1222 }
 0x2b1   :  { %v1252_v47 = vmul.f32 0.0078125, %v1223_v60  ;;  %v1283_v49 = vmul.f32 %v3586_v46, %v3586_v46 }
 0x2b3   :  { %1301 = vadd.xlane.f32.xlu0 %v1283_v49  ;;  %v3591_v52 = vsub.f32 %v3514_v16, %v1252_v47 }
 0x2b4   :  { %v1225_v15 = vpop.xlane.xlu0 %1224 }
 0x2b5   :  { %v1253_v53 = vmul.f32 0.0078125, %v1225_v15  ;;  %v1284_v54 = vmul.f32 %v3591_v52, %v3591_v52 }
 0x2b6   :  { %v1227_v48 = vpop.xlane.xlu1 %1226 }
 0x2b7   :  { %v1254_v55 = vmul.f32 0.0078125, %v1227_v48  ;;  %1303 = vadd.xlane.f32.xlu1 %v1284_v54  ;;  %v3596_v24 = vsub.f32 %v3519_v43, %v1253_v53  ;;  %v2565_v48 = vld [vmem:[%s4432_s0] sm:$0xff]  }
 0x2b9   :  { %v1285_v56 = vmul.f32 %v3596_v24, %v3596_v24  ;;  %v3601_v59 = vsub.f32 %v3522_v51, %v1254_v55  ;;  %v3661_v55 = vld [vmem:[%s4439_s7] ss:$0 sm:$0xff] }
 0x2bb   :  { %1305 = vadd.xlane.f32.xlu0 %v1285_v56  ;;  %v1286_v16 = vmul.f32 %v3601_v59, %v3601_v59 }
 0x2bc   :  { %v1229_v61 = vpop.xlane.xlu0 %1228 }
 0x2bd   :  { %v1255_v62 = vmul.f32 0.0078125, %v1229_v61  ;;  %1307 = vadd.xlane.f32.xlu1 %v1286_v16 }
 0x2be   :  { %v1231_v3 = vpop.xlane.xlu1 %1230 }
 0x2bf   :  { %v1256_v63 = vmul.f32 0.0078125, %v1231_v3  ;;  %v3606_v1 = vsub.f32 %v3529_v6, %v1255_v62  ;;  %v3667_v62 = vld [vmem:[%s4440_s8] ss:$0 sm:$0xff] }
 0x2c1   :  { %v1287_v43 = vmul.f32 %v3606_v1, %v3606_v1  ;;  %v3611_v7 = vsub.f32 %v3532_v13, %v1256_v63  ;;  %v2566_v63 = vunpack.c.l.bf16 %v2565_v48 }
 0x2c3   :  { %1309 = vadd.xlane.f32.xlu0 %v1287_v43  ;;  %v1288_v51 = vmul.f32 %v3611_v7, %v3611_v7 }
 0x2c4   :  { %v1233_v8 = vpop.xlane.xlu0 %1232 }
 0x2c5   :  { %v1257_v9 = vmul.f32 0.0078125, %v1233_v8  ;;  %1311 = vadd.xlane.f32.xlu1 %v1288_v51 }
 0x2c6   :  { %v1235_v0 = vpop.xlane.xlu1 %1234 }
 0x2c7   :  { %v1258_v11 = vmul.f32 0.0078125, %v1235_v0  ;;  %v3616_v12 = vsub.f32 %v3539_v30, %v1257_v9 }
 0x2c9   :  { %v1289_v6 = vmul.f32 %v3616_v12, %v3616_v12  ;;  %v3621_v20 = vsub.f32 %v3542_v38, %v1258_v11 }
 0x2cb   :  { %1313 = vadd.xlane.f32.xlu0 %v1289_v6  ;;  %v1290_v13 = vmul.f32 %v3621_v20, %v3621_v20 }
 0x2cc   :  { %v1237_v33 = vpop.xlane.xlu0 %1236 }
 0x2cd   :  { %v1259_v57 = vmul.f32 0.0078125, %v1237_v33  ;;  %1315 = vadd.xlane.f32.xlu1 %v1290_v13  ;;  %v2567_v13 = vunpack.c.h.bf16 %v2565_v48 }
 0x2ce   :  { %v1239_v21 = vpop.xlane.xlu1 %1238 }
 0x2cf   :  { %v1260_v22 = vmul.f32 0.0078125, %v1239_v21  ;;  %v3626_v23 = vsub.f32 %v3549_v50, %v1259_v57  ;;  %v2636_v21 = vld [vmem:[%s4432_s0 + $0x8] sm:$0xff]  }
 0x2d1   :  { %v1291_v30 = vmul.f32 %v3626_v23, %v3626_v23  ;;  %v3631_v26 = vsub.f32 %v3552_v58, %v1260_v22 }
 0x2d3   :  { %1317 = vadd.xlane.f32.xlu0 %v1291_v30  ;;  %v1292_v38 = vmul.f32 %v3631_v26, %v3631_v26 }
 0x2d4   :  { %v1241_v27 = vpop.xlane.xlu0 %1240 }
 0x2d5   :  { %v1261_v28 = vmul.f32 0.0078125, %v1241_v27  ;;  %1319 = vadd.xlane.f32.xlu1 %v1292_v38 }
 0x2d6   :  { %v1243_v4 = vpop.xlane.xlu1 %1242 }
 0x2d7   :  { %v1262_v29 = vmul.f32 0.0078125, %v1243_v4  ;;  %v3636_v31 = vsub.f32 %v3559_v14, %v1261_v28  ;;  %v2570_v4 = vunpack.c.l.bf16 %v2636_v21 }
 0x2d9   :  { %v1293_v50 = vmul.f32 %v3636_v31, %v3636_v31  ;;  %v3641_v32 = vsub.f32 %v3562_v25, %v1262_v29 }
 0x2db   :  { %1321 = vadd.xlane.f32.xlu0 %v1293_v50  ;;  %v1294_v58 = vmul.f32 %v3641_v32, %v3641_v32 }
 0x2dc   :  { %v1245_v34 = vpop.xlane.xlu0 %1244 }
 0x2dd   :  { %v1263_v35 = vmul.f32 0.0078125, %v1245_v34  ;;  %1323 = vadd.xlane.f32.xlu1 %v1294_v58 }
 0x2de   :  { %v1247_v36 = vpop.xlane.xlu1 %1246 }
 0x2df   :  { %v1264_v39 = vmul.f32 0.0078125, %v1247_v36  ;;  %v3646_v17 = vsub.f32 %v3569_v37, %v1263_v35 }
 0x2e1   :  { %v1295_v14 = vmul.f32 %v3646_v17, %v3646_v17  ;;  %v3651_v41 = vsub.f32 %v3572_v40, %v1264_v39 }
 0x2e3   :  { %1325 = vadd.xlane.f32.xlu0 %v1295_v14  ;;  %v1296_v25 = vmul.f32 %v3651_v41, %v3651_v41 }
 0x2e5   :  { %1327 = vadd.xlane.f32.xlu1 %v1296_v25 }
 0x338   :  { %v1298_v19 = vpop.xlane.xlu0 %1297 }
 0x339   :  { %v1329_v18 = vmul.f32 0.0078125, %v1298_v19 }
 0x33b   :  { %v1345_v42 = vadd.f32 1e-05, %v1329_v18  ;;  %v2637_v18 = vld [vmem:[%s4432_s0 + $0x10] sm:$0xff]  }
 0x33c   :  { %v1300_v44 = vpop.xlane.xlu1 %1299 }
 0x33d   :  { %2962 = vrsqrt.f32 %v1345_v42  ;;  %v1330_v45 = vmul.f32 0.0078125, %v1300_v44 }
 0x33f   :  { %v1346_v60 = vadd.f32 1e-05, %v1330_v45 }
 0x340   :  { %v1302_v37 = vpop.xlane.xlu0 %1301 }
 0x341   :  { %2964 = vrsqrt.f32 %v1346_v60  ;;  %v1331_v47 = vmul.f32 0.0078125, %v1302_v37 }
 0x343   :  { %v1347_v49 = vadd.f32 1e-05, %v1331_v47 }
 0x344   :  { %v1304_v15 = vpop.xlane.xlu1 %1303 }
 0x345   :  { %2966 = vrsqrt.f32 %v1347_v49  ;;  %v1332_v40 = vmul.f32 0.0078125, %v1304_v15  ;;  %v2574_v49 = vunpack.c.l.bf16 %v2637_v18 }
 0x347   :  { %v2963_v53 = vpop.eup %2962  ;;  %v1348_v54 = vadd.f32 1e-05, %v1332_v40 }
 0x348   :  { %v1306_v56 = vpop.xlane.xlu0 %1305  ;;  %v1377_v16 = vmul.f32 %v2963_v53, %v3576_v2 }
 0x349   :  { %2968 = vrsqrt.f32 %v1348_v54  ;;  %v1333_v61 = vmul.f32 0.0078125, %v1306_v56  ;;  %v2575_v56 = vunpack.c.h.bf16 %v2637_v18 }
 0x34a   :  { %v1308_v3 = vpop.xlane.xlu1 %1307  ;;  %v1399_v43 = vmul.f32 %v3661_v55, %v1377_v16 }
 0x34b   :  { %v2965_v51 = vpop.eup %2964  ;;  %v1349_v8 = vadd.f32 1e-05, %v1333_v61  ;;  %v1334_v9 = vmul.f32 0.0078125, %v1308_v3 }
 0x34c   :  { %v1421_v0 = vadd.f32 %v3667_v62, %v1399_v43  ;;  %v1378_v11 = vmul.f32 %v2965_v51, %v3581_v5 }
 0x34d   :  { %2970 = vrsqrt.f32 %v1349_v8  ;;  %v1350_v2 = vadd.f32 1e-05, %v1334_v9 }
 0x34e   :  { %v3672_v6 = vadd.f32 %v2566_v63, %v1421_v0  ;;  %v1400_v33 = vmul.f32 %v3661_v55, %v1378_v11 }
 0x34f   :  { %v2967_v57 = vpop.eup %2966  ;;  %2972 = vrsqrt.f32 %v1350_v2 }
 0x350   :  { %1455 = vadd.xlane.f32.xlu0 %v3672_v6  ;;  %v1310_v22 = vpop.xlane.xlu0 %1309  ;;  %v1422_v30 = vadd.f32 %v3667_v62, %v1400_v33  ;;  %v1379_v5 = vmul.f32 %v2967_v57, %v3586_v46  ;;  %v2571_v46 = vunpack.c.h.bf16 %v2636_v21 }
 0x351   :  { %v1335_v38 = vmul.f32 0.0078125, %v1310_v22 }
 0x352   :  { %v1312_v27 = vpop.xlane.xlu1 %1311  ;;  %v3681_v28 = vadd.f32 %v2567_v13, %v1422_v30  ;;  %v1401_v29 = vmul.f32 %v3661_v55, %v1379_v5 }
 0x353   :  { %v2969_v50 = vpop.eup %2968  ;;  %v1351_v58 = vadd.f32 1e-05, %v1335_v38  ;;  %v1336_v34 = vmul.f32 0.0078125, %v1312_v27 }
 0x354   :  { %1457 = vadd.xlane.f32.xlu1 %v3681_v28  ;;  %v1423_v35 = vadd.f32 %v3667_v62, %v1401_v29  ;;  %v1380_v36 = vmul.f32 %v2969_v50, %v3591_v52  ;;  %v2639_v29 = vld [vmem:[%s4432_s0 + $0x20] sm:$0xff]  }
 0x355   :  { %2974 = vrsqrt.f32 %v1351_v58  ;;  %v1352_v39 = vadd.f32 1e-05, %v1336_v34 }
 0x356   :  { %v3687_v14 = vadd.f32 %v2570_v4, %v1423_v35  ;;  %v1402_v25 = vmul.f32 %v3661_v55, %v1380_v36 }
 0x357   :  { %v2971_v19 = vpop.eup %2970  ;;  %2976 = vrsqrt.f32 %v1352_v39  ;;  %v2582_v39 = vunpack.c.l.bf16 %v2639_v29 }
 0x358   :  { %1459 = vadd.xlane.f32.xlu0 %v3687_v14  ;;  %v1314_v42 = vpop.xlane.xlu0 %1313  ;;  %v1424_v44 = vadd.f32 %v3667_v62, %v1402_v25  ;;  %v1381_v52 = vmul.f32 %v2971_v19, %v3596_v24 }
 0x359   :  { %v2973_v45 = vpop.eup %2972  ;;  %v1337_v60 = vmul.f32 0.0078125, %v1314_v42 }
 0x35a   :  { %v1316_v37 = vpop.xlane.xlu1 %1315  ;;  %v3696_v47 = vadd.f32 %v2571_v46, %v1424_v44  ;;  %v1403_v15 = vmul.f32 %v3661_v55, %v1381_v52  ;;  %v1382_v40 = vmul.f32 %v2973_v45, %v3601_v59  ;;  %v2638_v59 = vld [vmem:[%s4432_s0 + $0x18] sm:$0xff]   ;;  %v2583_v44 = vunpack.c.h.bf16 %v2639_v29 }
 0x35b   :  { %v1353_v53 = vadd.f32 1e-05, %v1337_v60  ;;  %v1338_v54 = vmul.f32 0.0078125, %v1316_v37  ;;  %v2578_v2 = vunpack.c.l.bf16 %v2638_v59  ;;  %v2579_v30 = vunpack.c.h.bf16 %v2638_v59 }
 0x35c   :  { %1461 = vadd.xlane.f32.xlu1 %v3696_v47  ;;  %v1425_v48 = vadd.f32 %v3667_v62, %v1403_v15  ;;  %v1404_v16 = vmul.f32 %v3661_v55, %v1382_v40 }
 0x35d   :  { %2978 = vrsqrt.f32 %v1353_v53  ;;  %v1354_v24 = vadd.f32 1e-05, %v1338_v54 }
 0x35e   :  { %v3703_v61 = vadd.f32 %v2574_v49, %v1425_v48  ;;  %v1426_v3 = vadd.f32 %v3667_v62, %v1404_v16  ;;  %v2640_v49 = vld [vmem:[%s4432_s0 + $0x28] sm:$0xff]  }
 0x35f   :  { %v2975_v63 = vpop.eup %2974  ;;  %2980 = vrsqrt.f32 %v1354_v24 }
 0x360   :  { %1463 = vadd.xlane.f32.xlu0 %v3703_v61  ;;  %v1318_v43 = vpop.xlane.xlu0 %1317  ;;  %v3710_v51 = vadd.f32 %v2575_v56, %v1426_v3  ;;  %v1383_v8 = vmul.f32 %v2975_v63, %v3606_v1  ;;  %v2586_v56 = vunpack.c.l.bf16 %v2640_v49 }
 0x361   :  { %v2977_v9 = vpop.eup %2976  ;;  %v1339_v0 = vmul.f32 0.0078125, %v1318_v43  ;;  %v2587_v43 = vunpack.c.h.bf16 %v2640_v49 }
 0x362   :  { %1465 = vadd.xlane.f32.xlu1 %v3710_v51  ;;  %v1320_v11 = vpop.xlane.xlu1 %1319  ;;  %v1405_v13 = vmul.f32 %v3661_v55, %v1383_v8  ;;  %v1384_v33 = vmul.f32 %v2977_v9, %v3611_v7 }
 0x363   :  { %v1355_v57 = vadd.f32 1e-05, %v1339_v0  ;;  %v1340_v21 = vmul.f32 0.0078125, %v1320_v11 }
 0x364   :  { %v1427_v22 = vadd.f32 %v3667_v62, %v1405_v13  ;;  %v1406_v5 = vmul.f32 %v3661_v55, %v1384_v33 }
 0x365   :  { %2982 = vrsqrt.f32 %v1355_v57  ;;  %v1356_v38 = vadd.f32 1e-05, %v1340_v21 }
 0x366   :  { %v3718_v1 = vadd.f32 %v2578_v2, %v1427_v22  ;;  %v1428_v27 = vadd.f32 %v3667_v62, %v1406_v5  ;;  %v2641_v2 = vld [vmem:[%s4432_s0 + $0x30] sm:$0xff]  }
 0x367   :  { %v2979_v4 = vpop.eup %2978  ;;  %2984 = vrsqrt.f32 %v1356_v38  ;;  %v2590_v57 = vunpack.c.l.bf16 %v2641_v2  ;;  %v2591_v5 = vunpack.c.h.bf16 %v2641_v2 }
 0x368   :  { %1467 = vadd.xlane.f32.xlu0 %v3718_v1  ;;  %v1322_v7 = vpop.xlane.xlu0 %1321  ;;  %v3725_v50 = vadd.f32 %v2579_v30, %v1428_v27  ;;  %v1385_v58 = vmul.f32 %v2979_v4, %v3616_v12 }
 0x369   :  { %v2981_v34 = vpop.eup %2980  ;;  %v1341_v35 = vmul.f32 0.0078125, %v1322_v7 }
 0x36a   :  { %1469 = vadd.xlane.f32.xlu1 %v3725_v50  ;;  %v1324_v36 = vpop.xlane.xlu1 %1323  ;;  %v1407_v46 = vmul.f32 %v3661_v55, %v1385_v58  ;;  %v1386_v25 = vmul.f32 %v2981_v34, %v3621_v20 }
 0x36b   :  { %v1357_v19 = vadd.f32 1e-05, %v1341_v35  ;;  %v1342_v18 = vmul.f32 0.0078125, %v1324_v36 }
 0x36c   :  { %v1429_v42 = vadd.f32 %v3667_v62, %v1407_v46  ;;  %v1408_v52 = vmul.f32 %v3661_v55, %v1386_v25 }
 0x36d   :  { %2986 = vrsqrt.f32 %v1357_v19  ;;  %v1358_v45 = vadd.f32 1e-05, %v1342_v18 }
 0x36e   :  { %v3733_v12 = vadd.f32 %v2582_v39, %v1429_v42  ;;  %v1430_v60 = vadd.f32 %v3667_v62, %v1408_v52  ;;  %v2946_v42 = vld [vmem:[#allocation7] sm:$0xff]  }
 0x36f   :  { %v2983_v37 = vpop.eup %2982  ;;  %2988 = vrsqrt.f32 %v1358_v45  ;;  %2794 = vmatprep.subr.bf16.mxu0 %v2946_v42  ;;  %2826 = vmatprep.subr.bf16.mxu1 %v2946_v42 }
 0x370   :  { %1471 = vadd.xlane.f32.xlu0 %v3733_v12  ;;  %v1326_v20 = vpop.xlane.xlu0 %1325  ;;  %v3740_v15 = vadd.f32 %v2583_v44, %v1430_v60  ;;  %v1387_v40 = vmul.f32 %v2983_v37, %v3626_v23  ;;  %v2947_v44 = vld [vmem:[#allocation7 + $0x8] sm:$0xff]   ;;  %2795 = vmatpush3.bf16.msra.mxu0 %v2946_v42 }
 0x371   :  { %v2985_v53 = vpop.eup %2984  ;;  %v1343_v54 = vmul.f32 0.0078125, %v1326_v20  ;;  %2834 = vmatpush3.bf16.msra.mxu1 %v2946_v42  ;;  %2796 = vmatprep.subr.bf16.mxu0 %v2947_v44  ;;  %v2953_v42 = vld [vmem:[#allocation7 + $0x38] sm:$0xff]  }
 0x372   :  { %1473 = vadd.xlane.f32.xlu1 %v3740_v15  ;;  %v1328_v48 = vpop.xlane.xlu1 %1327  ;;  %v1409_v16 = vmul.f32 %v3661_v55, %v1387_v40  ;;  %v1388_v24 = vmul.f32 %v2985_v53, %v3631_v26  ;;  %2827 = vmatprep.subr.bf16.mxu1 %v2947_v44 }
 0x373   :  { %v1359_v3 = vadd.f32 1e-05, %v1343_v54  ;;  %v1344_v63 = vmul.f32 0.0078125, %v1328_v48 }
 0x374   :  { %v1431_v59 = vadd.f32 %v3667_v62, %v1409_v16  ;;  %v1410_v8 = vmul.f32 %v3661_v55, %v1388_v24  ;;  %2797 = vmatpush3.bf16.msra.mxu0 %v2947_v44 }
 0x375   :  { %2990 = vrsqrt.f32 %v1359_v3  ;;  %v1360_v9 = vadd.f32 1e-05, %v1344_v63  ;;  %2835 = vmatpush3.bf16.msra.mxu1 %v2947_v44 }
 0x376   :  { %v3748_v23 = vadd.f32 %v2586_v56, %v1431_v59  ;;  %v1432_v0 = vadd.f32 %v3667_v62, %v1410_v8 }
 0x377   :  { %v2987_v11 = vpop.eup %2986  ;;  %2992 = vrsqrt.f32 %v1360_v9 }
 0x378   :  { %1475 = vadd.xlane.f32.xlu0 %v3748_v23  ;;  %v3755_v26 = vadd.f32 %v2587_v43, %v1432_v0  ;;  %v1389_v13 = vmul.f32 %v2987_v11, %v3636_v31  ;;  %v2642_v31 = vld [vmem:[%s4432_s0 + $0x38] sm:$0xff]  }
 0x379   :  { %v2989_v33 = vpop.eup %2988  ;;  %v2594_v34 = vunpack.c.l.bf16 %v2642_v31  ;;  %v2595_v46 = vunpack.c.h.bf16 %v2642_v31 }
 0x37a   :  { %1477 = vadd.xlane.f32.xlu1 %v3755_v26  ;;  %v1411_v21 = vmul.f32 %v3661_v55, %v1389_v13  ;;  %v1390_v22 = vmul.f32 %v2989_v33, %v3641_v32 }
 0x37c   :  { %v1433_v30 = vadd.f32 %v3667_v62, %v1411_v21  ;;  %v1412_v38 = vmul.f32 %v3661_v55, %v1390_v22  ;;  %v2949_v22 = vld [vmem:[#allocation7 + $0x18] sm:$0xff]  }
 0x37e   :  { %v3763_v27 = vadd.f32 %v2590_v57, %v1433_v30  ;;  %v1434_v4 = vadd.f32 %v3667_v62, %v1412_v38 }
 0x37f   :  { %v2991_v29 = vpop.eup %2990 }
 0x380   :  { %1479 = vadd.xlane.f32.xlu0 %v3763_v27  ;;  %v3770_v7 = vadd.f32 %v2591_v5, %v1434_v4  ;;  %v1391_v32 = vmul.f32 %v2991_v29, %v3646_v17  ;;  %v2950_v4 = vld [vmem:[#allocation7 + $0x20] sm:$0xff]  }
 0x381   :  { %v2993_v58 = vpop.eup %2992 }
 0x382   :  { %1481 = vadd.xlane.f32.xlu1 %v3770_v7  ;;  %v1413_v35 = vmul.f32 %v3661_v55, %v1391_v32  ;;  %v1392_v36 = vmul.f32 %v2993_v58, %v3651_v41  ;;  %v2951_v58 = vld [vmem:[#allocation7 + $0x28] sm:$0xff]  }
 0x384   :  { %v1435_v39 = vadd.f32 %v3667_v62, %v1413_v35  ;;  %v1414_v25 = vmul.f32 %v3661_v55, %v1392_v36 }
 0x386   :  { %v3778_v19 = vadd.f32 %v2594_v34, %v1435_v39  ;;  %v1436_v18 = vadd.f32 %v3667_v62, %v1414_v25  ;;  %v2952_v39 = vld [vmem:[#allocation7 + $0x30] sm:$0xff]  }
 0x388   :  { %1483 = vadd.xlane.f32.xlu0 %v3778_v19  ;;  %v3782_v17 = vadd.f32 %v2595_v46, %v1436_v18 }
 0x38a   :  { %1485 = vadd.xlane.f32.xlu1 %v3782_v17 }
 0x3dd   :  { %v1456_v41 = vpop.xlane.xlu0 %1455 }
 0x3de   :  { %v1487_v55 = vmul.f32 0.0078125, %v1456_v41 }
 0x3e0   :  { %v3786_v62 = vsub.f32 %v3672_v6, %v1487_v55 }
 0x3e1   :  { %v1458_v52 = vpop.xlane.xlu1 %1457 }
 0x3e2   :  { %v1488_v45 = vmul.f32 0.0078125, %v1458_v52  ;;  %v1519_v60 = vmul.f32 %v3786_v62, %v3786_v62 }
 0x3e4   :  { %1535 = vadd.xlane.f32.xlu0 %v1519_v60  ;;  %v3791_v37 = vsub.f32 %v3681_v28, %v1488_v45 }
 0x3e5   :  { %v1460_v49 = vpop.xlane.xlu0 %1459 }
 0x3e6   :  { %v1489_v20 = vmul.f32 0.0078125, %v1460_v49  ;;  %v1520_v40 = vmul.f32 %v3791_v37, %v3791_v37 }
 0x3e8   :  { %1537 = vadd.xlane.f32.xlu1 %v1520_v40  ;;  %v3796_v53 = vsub.f32 %v3687_v14, %v1489_v20 }
 0x3e9   :  { %v1462_v6 = vpop.xlane.xlu1 %1461 }
 0x3ea   :  { %v1490_v54 = vmul.f32 0.0078125, %v1462_v6  ;;  %v1521_v48 = vmul.f32 %v3796_v53, %v3796_v53 }
 0x3ec   :  { %1539 = vadd.xlane.f32.xlu0 %v1521_v48  ;;  %v3801_v56 = vsub.f32 %v3696_v47, %v1490_v54  ;;  %v2111_v54 = vld [vmem:[%s4434_s2 + $0x8] sm:$0xff]  ;;  %v2112_v48 = vld [vmem:[%s4434_s2 + $0x10] sm:$0xff] }
 0x3ed   :  { %v1464_v28 = vpop.xlane.xlu0 %1463 }
 0x3ee   :  { %v1491_v16 = vmul.f32 0.0078125, %v1464_v28  ;;  %v1522_v24 = vmul.f32 %v3801_v56, %v3801_v56  ;;  %v2113_v28 = vld [vmem:[%s4434_s2 + $0x18] sm:$0xff] }
 0x3ef   :  { %v1466_v3 = vpop.xlane.xlu1 %1465 }
 0x3f0   :  { %v1492_v63 = vmul.f32 0.0078125, %v1466_v3  ;;  %1541 = vadd.xlane.f32.xlu1 %v1522_v24  ;;  %v3806_v14 = vsub.f32 %v3703_v61, %v1491_v16  ;;  %v2121_v16 = vld [vmem:[%s4434_s2 + $0x58] sm:$0xff]  ;;  %v2114_v24 = vld [vmem:[%s4434_s2 + $0x20] sm:$0xff]  ;;  %v2123_v3 = vld [vmem:[%s4434_s2 + $0x68] sm:$0xff] }
 0x3f2   :  { %v1523_v59 = vmul.f32 %v3806_v14, %v3806_v14  ;;  %v3811_v43 = vsub.f32 %v3710_v51, %v1492_v63  ;;  %v2948_v51 = vld [vmem:[#allocation7 + $0x10] sm:$0xff]   ;;  %v2115_v63 = vld [vmem:[%s4434_s2 + $0x28] sm:$0xff] }
 0x3f3   :  { %2798 = vmatprep.subr.bf16.mxu0 %v2948_v51  ;;  %2828 = vmatprep.subr.bf16.mxu1 %v2948_v51 }
 0x3f4   :  { %1543 = vadd.xlane.f32.xlu0 %v1523_v59  ;;  %v1524_v47 = vmul.f32 %v3811_v43, %v3811_v43  ;;  %2799 = vmatpush3.bf16.msra.mxu0 %v2948_v51  ;;  %v2116_v59 = vld [vmem:[%s4434_s2 + $0x30] sm:$0xff] }
 0x3f5   :  { %v1468_v8 = vpop.xlane.xlu0 %1467  ;;  %2836 = vmatpush3.bf16.msra.mxu1 %v2948_v51  ;;  %2800 = vmatprep.subr.bf16.mxu0 %v2949_v22 }
 0x3f6   :  { %v1493_v9 = vmul.f32 0.0078125, %v1468_v8  ;;  %1545 = vadd.xlane.f32.xlu1 %v1524_v47  ;;  %2829 = vmatprep.subr.bf16.mxu1 %v2949_v22  ;;  %v2117_v47 = vld [vmem:[%s4434_s2 + $0x38] sm:$0xff]  ;;  %v2118_v8 = vld [vmem:[%s4434_s2 + $0x40] sm:$0xff] }
 0x3f7   :  { %v1470_v0 = vpop.xlane.xlu1 %1469 }
 0x3f8   :  { %v1494_v11 = vmul.f32 0.0078125, %v1470_v0  ;;  %v3816_v2 = vsub.f32 %v3718_v1, %v1493_v9  ;;  %2801 = vmatpush3.bf16.msra.mxu0 %v2949_v22  ;;  %v2120_v9 = vld [vmem:[%s4434_s2 + $0x50] sm:$0xff]  ;;  %v2122_v0 = vld [vmem:[%s4434_s2 + $0x60] sm:$0xff] }
 0x3f9   :  { %2837 = vmatpush3.bf16.msra.mxu1 %v2949_v22  ;;  %2802 = vmatprep.subr.bf16.mxu0 %v2950_v4 }
 0x3fa   :  { %v1525_v61 = vmul.f32 %v3816_v2, %v3816_v2  ;;  %v3821_v13 = vsub.f32 %v3725_v50, %v1494_v11  ;;  %2830 = vmatprep.subr.bf16.mxu1 %v2950_v4 }
 0x3fc   :  { %1547 = vadd.xlane.f32.xlu0 %v1525_v61  ;;  %v1526_v33 = vmul.f32 %v3821_v13, %v3821_v13  ;;  %2803 = vmatpush3.bf16.msra.mxu0 %v2950_v4 }
 0x3fd   :  { %v1472_v57 = vpop.xlane.xlu0 %1471  ;;  %2838 = vmatpush3.bf16.msra.mxu1 %v2950_v4  ;;  %2804 = vmatprep.subr.bf16.mxu0 %v2951_v58 }
 0x3fe   :  { %v1495_v21 = vmul.f32 0.0078125, %v1472_v57  ;;  %1549 = vadd.xlane.f32.xlu1 %v1526_v33  ;;  %2831 = vmatprep.subr.bf16.mxu1 %v2951_v58 }
 0x3ff   :  { %v1474_v1 = vpop.xlane.xlu1 %1473 }
 0x400   :  { %v1496_v30 = vmul.f32 0.0078125, %v1474_v1  ;;  %v3826_v5 = vsub.f32 %v3733_v12, %v1495_v21  ;;  %2805 = vmatpush3.bf16.msra.mxu0 %v2951_v58 }
 0x401   :  { %2839 = vmatpush3.bf16.msra.mxu1 %v2951_v58  ;;  %2806 = vmatprep.subr.bf16.mxu0 %v2952_v39  ;;  %v3911_v58 = vld [vmem:[%s4441_s9] ss:$0 sm:$0xff] }
 0x402   :  { %v1527_v50 = vmul.f32 %v3826_v5, %v3826_v5  ;;  %v3831_v38 = vsub.f32 %v3740_v15, %v1496_v30  ;;  %2832 = vmatprep.subr.bf16.mxu1 %v2952_v39 }
 0x404   :  { %1551 = vadd.xlane.f32.xlu0 %v1527_v50  ;;  %v1528_v29 = vmul.f32 %v3831_v38, %v3831_v38  ;;  %2807 = vmatpush3.bf16.msra.mxu0 %v2952_v39 }
 0x405   :  { %v1476_v31 = vpop.xlane.xlu0 %1475  ;;  %2840 = vmatpush3.bf16.msra.mxu1 %v2952_v39  ;;  %2808 = vmatprep.subr.bf16.mxu0 %v2953_v42 }
 0x406   :  { %v1497_v12 = vmul.f32 0.0078125, %v1476_v31  ;;  %1553 = vadd.xlane.f32.xlu1 %v1528_v29  ;;  %2833 = vmatprep.subr.bf16.mxu1 %v2953_v42 }
 0x407   :  { %v1478_v32 = vpop.xlane.xlu1 %1477 }
 0x408   :  { %v3836_v34 = vsub.f32 %v3748_v23, %v1497_v12  ;;  %v1498_v15 = vmul.f32 0.0078125, %v1478_v32  ;;  %2809 = vmatpush3.bf16.msra.mxu0 %v2953_v42 }
 0x409   :  { %2841 = vmatpush3.bf16.msra.mxu1 %v2953_v42 }
 0x40a   :  { %v1529_v35 = vmul.f32 %v3836_v34, %v3836_v34  ;;  %v3841_v36 = vsub.f32 %v3755_v26, %v1498_v15 }
 0x40c   :  { %1555 = vadd.xlane.f32.xlu0 %v1529_v35  ;;  %v1530_v46 = vmul.f32 %v3841_v36, %v3841_v36 }
 0x40d   :  { %v1480_v25 = vpop.xlane.xlu0 %1479 }
 0x40e   :  { %v1499_v23 = vmul.f32 0.0078125, %v1480_v25  ;;  %1557 = vadd.xlane.f32.xlu1 %v1530_v46 }
 0x40f   :  { %v1482_v18 = vpop.xlane.xlu1 %1481 }
 0x410   :  { %v3846_v44 = vsub.f32 %v3763_v27, %v1499_v23  ;;  %v1500_v26 = vmul.f32 0.0078125, %v1482_v18 }
 0x412   :  { %v1531_v41 = vmul.f32 %v3846_v44, %v3846_v44  ;;  %v3851_v55 = vsub.f32 %v3770_v7, %v1500_v26 }
 0x414   :  { %1559 = vadd.xlane.f32.xlu0 %v1531_v41  ;;  %v1532_v52 = vmul.f32 %v3851_v55, %v3851_v55 }
 0x415   :  { %v1484_v45 = vpop.xlane.xlu0 %1483 }
 0x416   :  { %v1501_v60 = vmul.f32 0.0078125, %v1484_v45  ;;  %1561 = vadd.xlane.f32.xlu1 %v1532_v52 }
 0x417   :  { %v1486_v27 = vpop.xlane.xlu1 %1485 }
 0x418   :  { %v3856_v49 = vsub.f32 %v3778_v19, %v1501_v60  ;;  %v1502_v20 = vmul.f32 0.0078125, %v1486_v27  ;;  %v2110_v19 = vld [vmem:[%s4434_s2] sm:$0xff] }
 0x41a   :  { %v1533_v40 = vmul.f32 %v3856_v49, %v3856_v49  ;;  %v3861_v7 = vsub.f32 %v3782_v17, %v1502_v20  ;;  %v2119_v17 = vld [vmem:[%s4434_s2 + $0x48] sm:$0xff] }
 0x41c   :  { %1563 = vadd.xlane.f32.xlu0 %v1533_v40  ;;  %v1534_v6 = vmul.f32 %v3861_v7, %v3861_v7 }
 0x41e   :  { %1565 = vadd.xlane.f32.xlu1 %v1534_v6 }
 0x42f   :  { %2130 = vperm.xlu1 %2857, %v2111_v54  }
 0x432   :  { %2127 = vperm.xlu0 %2856, %v2110_v19  }
 0x433   :  { %2133 = vperm.xlu1 %2857, %v2112_v48  }
 0x436   :  { %2154 = vperm.xlu0 %2856, %v2119_v17  }
 0x437   :  { %2136 = vperm.xlu1 %2857, %v2113_v28  }
 0x43a   :  { %2160 = vperm.xlu0 %2856, %v2121_v16  }
 0x43b   :  { %2139 = vperm.xlu1 %2857, %v2114_v24  }
 0x43e   :  { %2166 = vperm.xlu0 %2856, %v2123_v3  }
 0x43f   :  { %2142 = vperm.xlu1 %2857, %v2115_v63  }
 0x443   :  { %2145 = vperm.xlu1 %2857, %v2116_v59  }
 0x447   :  { %2148 = vperm.xlu1 %2857, %v2117_v47  }
 0x44b   :  { %2151 = vperm.xlu1 %2857, %v2118_v8  }
 0x44f   :  { %2157 = vperm.xlu1 %2857, %v2120_v9  }
 0x453   :  { %2163 = vperm.xlu1 %2857, %v2122_v0  }
 0x471   :  { %v1536_v11 = vpop.xlane.xlu0 %1535 }
 0x472   :  { %v1567_v61 = vmul.f32 0.0078125, %v1536_v11 }
 0x474   :  { %v1583_v51 = vadd.f32 1e-05, %v1567_v61 }
 0x475   :  { %v1538_v33 = vpop.xlane.xlu1 %1537 }
 0x476   :  { %2994 = vrsqrt.f32 %v1583_v51  ;;  %v1568_v57 = vmul.f32 0.0078125, %v1538_v33 }
 0x478   :  { %v1584_v21 = vadd.f32 1e-05, %v1568_v57 }
 0x479   :  { %v1540_v1 = vpop.xlane.xlu0 %1539 }
 0x47a   :  { %2996 = vrsqrt.f32 %v1584_v21  ;;  %v1569_v22 = vmul.f32 0.0078125, %v1540_v1 }
 0x47c   :  { %v1585_v30 = vadd.f32 1e-05, %v1569_v22 }
 0x47d   :  { %v1542_v50 = vpop.xlane.xlu1 %1541 }
 0x47e   :  { %2998 = vrsqrt.f32 %v1585_v30  ;;  %v1570_v4 = vmul.f32 0.0078125, %v1542_v50 }
 0x480   :  { %v2995_v29 = vpop.eup %2994  ;;  %v1586_v31 = vadd.f32 1e-05, %v1570_v4 }
 0x481   :  { %v1544_v12 = vpop.xlane.xlu0 %1543  ;;  %v1615_v32 = vmul.f32 %v2995_v29, %v3786_v62  ;;  %v3918_v62 = vld [vmem:[%s4442_s10] ss:$0 sm:$0xff] }
 0x482   :  { %3000 = vrsqrt.f32 %v1586_v31  ;;  %v1571_v15 = vmul.f32 0.0078125, %v1544_v12 }
 0x483   :  { %v1546_v35 = vpop.xlane.xlu1 %1545  ;;  %v1637_v18 = vmul.f32 %v3911_v58, %v1615_v32 }
 0x484   :  { %v2997_v39 = vpop.eup %2996  ;;  %v1587_v46 = vadd.f32 1e-05, %v1571_v15  ;;  %v1572_v25 = vmul.f32 0.0078125, %v1546_v35 }
 0x485   :  { %v1616_v23 = vmul.f32 %v2997_v39, %v3791_v37  ;;  %v1659_v60 = vadd.f32 %v3918_v62, %v1637_v18 }
 0x486   :  { %3002 = vrsqrt.f32 %v1587_v46  ;;  %v1588_v42 = vadd.f32 1e-05, %v1572_v25 }
 0x487   :  { %v1638_v26 = vmul.f32 %v3911_v58, %v1616_v23 }
 0x488   :  { %v2999_v41 = vpop.eup %2998  ;;  %3004 = vrsqrt.f32 %v1588_v42 }
 0x489   :  { %v1617_v52 = vmul.f32 %v2999_v41, %v3796_v53  ;;  %v1548_v45 = vpop.xlane.xlu0 %1547  ;;  %v1660_v37 = vadd.f32 %v3918_v62, %v1638_v26 }
 0x48a   :  { %v1573_v27 = vmul.f32 0.0078125, %v1548_v45 }
 0x48b   :  { %v1550_v20 = vpop.xlane.xlu1 %1549  ;;  %v1675_v40 = vpack.c.bf16 %v1660_v37, %v1659_v60  ;;  %v1639_v48 = vmul.f32 %v3911_v58, %v1617_v52 }
 0x48c   :  { %v3001_v6 = vpop.eup %3000  ;;  %v1589_v54 = vadd.f32 1e-05, %v1573_v27  ;;  %v1574_v19 = vmul.f32 0.0078125, %v1550_v20 }
 0x48d   :  { %v1618_v17 = vmul.f32 %v3001_v6, %v3801_v56  ;;  %2810 = vmatprep.mubr.bf16.mxu0 %v1675_v40  ;;  %v1661_v3 = vadd.f32 %v3918_v62, %v1639_v48 }
 0x48e   :  { %3006 = vrsqrt.f32 %v1589_v54  ;;  %v1590_v28 = vadd.f32 1e-05, %v1574_v19 }
 0x48f   :  { %v1640_v53 = vmul.f32 %v3911_v58, %v1618_v17 }
 0x490   :  { %v3003_v16 = vpop.eup %3002  ;;  %3008 = vrsqrt.f32 %v1590_v28 }
 0x491   :  { %v1552_v24 = vpop.xlane.xlu0 %1551  ;;  %v1662_v63 = vadd.f32 %v3918_v62, %v1640_v53  ;;  %v1619_v59 = vmul.f32 %v3003_v16, %v3806_v14 }
 0x492   :  { %v3005_v47 = vpop.eup %3004  ;;  %v1575_v8 = vmul.f32 0.0078125, %v1552_v24 }
 0x493   :  { %v1554_v9 = vpop.xlane.xlu1 %1553  ;;  %v1676_v0 = vpack.c.bf16 %v1662_v63, %v1661_v3  ;;  %v1620_v56 = vmul.f32 %v3005_v47, %v3811_v43  ;;  %v1641_v11 = vmul.f32 %v3911_v58, %v1619_v59 }
 0x494   :  { %v1591_v61 = vadd.f32 1e-05, %v1575_v8  ;;  %v1576_v51 = vmul.f32 0.0078125, %v1554_v9 }
 0x495   :  { %2811 = vmatmul.mubr.bf16.vlgmr.msra.gmra.mrb[64].mxu0 %v1676_v0  ;;  %v1642_v33 = vmul.f32 %v3911_v58, %v1620_v56  ;;  %v1663_v21 = vadd.f32 %v3918_v62, %v1641_v11 }
 0x496   :  { %3010 = vrsqrt.f32 %v1591_v61  ;;  %v1592_v57 = vadd.f32 1e-05, %v1576_v51 }
 0x497   :  { %v1664_v1 = vadd.f32 %v3918_v62, %v1642_v33 }
 0x498   :  { %v3007_v14 = vpop.eup %3006  ;;  %3012 = vrsqrt.f32 %v1592_v57 }
 0x499   :  { %v1556_v22 = vpop.xlane.xlu0 %1555  ;;  %v1677_v30 = vpack.c.bf16 %v1664_v1, %v1663_v21  ;;  %v1621_v50 = vmul.f32 %v3007_v14, %v3816_v2 }
 0x49a   :  { %v3009_v43 = vpop.eup %3008  ;;  %v1577_v4 = vmul.f32 0.0078125, %v1556_v22 }
 0x49b   :  { %v1558_v29 = vpop.xlane.xlu1 %1557  ;;  %2814 = vmatprep.mubr.bf16.mxu0 %v1677_v30  ;;  %v1622_v31 = vmul.f32 %v3009_v43, %v3821_v13  ;;  %v1643_v12 = vmul.f32 %v3911_v58, %v1621_v50 }
 0x49c   :  { %v1593_v32 = vadd.f32 1e-05, %v1577_v4  ;;  %v1578_v15 = vmul.f32 0.0078125, %v1558_v29  ;;  %v3966_v4 = vand.u32 127, %v191_v10 }
 0x49d   :  { %v1644_v35 = vmul.f32 %v3911_v58, %v1622_v31  ;;  %v1665_v46 = vadd.f32 %v3918_v62, %v1643_v12 }
 0x49e   :  { %3014 = vrsqrt.f32 %v1593_v32  ;;  %v1594_v39 = vadd.f32 1e-05, %v1578_v15  ;;  %vm1933_vm0 = vcmp.lt.s32.totalorder %v3966_v4, 2 }
 0x49f   :  { %v1666_v25 = vadd.f32 %v3918_v62, %v1644_v35 }
 0x4a0   :  { %v3011_v23 = vpop.eup %3010  ;;  %3016 = vrsqrt.f32 %v1594_v39 }
 0x4a1   :  { %v1560_v2 = vpop.xlane.xlu0 %1559  ;;  %v1678_v18 = vpack.c.bf16 %v1666_v25, %v1665_v46  ;;  %v1623_v42 = vmul.f32 %v3011_v23, %v3826_v5 }
 0x4a2   :  { %v3013_v26 = vpop.eup %3012  ;;  %v1579_v13 = vmul.f32 0.0078125, %v1560_v2 }
 0x4a3   :  { %v1562_v41 = vpop.xlane.xlu1 %1561  ;;  %2815 = vmatmul.mubr.bf16.gmra.mrb[68].mxu0 %v1678_v18  ;;  %v1624_v52 = vmul.f32 %v3013_v26, %v3831_v38  ;;  %v1645_v45 = vmul.f32 %v3911_v58, %v1623_v42 }
 0x4a4   :  { %v1595_v60 = vadd.f32 1e-05, %v1579_v13  ;;  %v1580_v37 = vmul.f32 0.0078125, %v1562_v41 }
 0x4a5   :  { %v1646_v27 = vmul.f32 %v3911_v58, %v1624_v52  ;;  %v1667_v40 = vadd.f32 %v3918_v62, %v1645_v45 }
 0x4a6   :  { %3018 = vrsqrt.f32 %v1595_v60  ;;  %v1596_v20 = vadd.f32 1e-05, %v1580_v37 }
 0x4a7   :  { %v1668_v6 = vadd.f32 %v3918_v62, %v1646_v27 }
 0x4a8   :  { %v3015_v54 = vpop.eup %3014  ;;  %3020 = vrsqrt.f32 %v1596_v20 }
 0x4a9   :  { %v1625_v5 = vmul.f32 %v3015_v54, %v3836_v34  ;;  %v1564_v19 = vpop.xlane.xlu0 %1563  ;;  %v1679_v48 = vpack.c.bf16 %v1668_v6, %v1667_v40 }
 0x4aa   :  { %v3017_v17 = vpop.eup %3016  ;;  %v1581_v38 = vmul.f32 0.0078125, %v1564_v19 }
 0x4ab   :  { %v1647_v28 = vmul.f32 %v3911_v58, %v1625_v5  ;;  %v1626_v53 = vmul.f32 %v3017_v17, %v3841_v36  ;;  %v1566_v16 = vpop.xlane.xlu1 %1565  ;;  %2818 = vmatprep.mubr.bf16.mxu1 %v1679_v48 }
 0x4ac   :  { %v1597_v24 = vadd.f32 1e-05, %v1581_v38  ;;  %v1582_v3 = vmul.f32 0.0078125, %v1566_v16 }
 0x4ad   :  { %v1648_v63 = vmul.f32 %v3911_v58, %v1626_v53  ;;  %v1669_v47 = vadd.f32 %v3918_v62, %v1647_v28 }
 0x4ae   :  { %3022 = vrsqrt.f32 %v1597_v24  ;;  %v1598_v59 = vadd.f32 1e-05, %v1582_v3 }
 0x4af   :  { %v1670_v34 = vadd.f32 %v3918_v62, %v1648_v63 }
 0x4b0   :  { %v3019_v8 = vpop.eup %3018  ;;  %3024 = vrsqrt.f32 %v1598_v59 }
 0x4b1   :  { %v1680_v9 = vpack.c.bf16 %v1670_v34, %v1669_v47  ;;  %v1627_v0 = vmul.f32 %v3019_v8, %v3846_v44  ;;  %v4032_v37 = vpop.permute.xlu0 %2127 }
 0x4b2   :  { %v3021_v56 = vpop.eup %3020  ;;  %vm2174_vm3 = vcmp.eq.s32.totalorder %v3966_v4, %v4032_v37 }
 0x4b3   :  { %2819 = vmatmul.mubr.bf16.vlgmr.msra.gmra.mrb[64].mxu1 %v1680_v9  ;;  %v1628_v36 = vmul.f32 %v3021_v56, %v3851_v55  ;;  %v1649_v11 = vmul.f32 %v3911_v58, %v1627_v0 }
 0x4b5   :  { %v1650_v61 = vmul.f32 %v3911_v58, %v1628_v36  ;;  %v1671_v51 = vadd.f32 %v3918_v62, %v1649_v11  ;;  %v4055_v5 = vpop.permute.xlu0 %2154 }
 0x4b6   :  { %vm2183_vm11 = vcmp.eq.s32.totalorder %v3966_v4, %v4055_v5 }
 0x4b7   :  { %v1672_v33 = vadd.f32 %v3918_v62, %v1650_v61 }
 0x4b8   :  { %v3023_v57 = vpop.eup %3022 }
 0x4b9   :  { %v1681_v21 = vpack.c.bf16 %v1672_v33, %v1671_v51  ;;  %v1629_v1 = vmul.f32 %v3023_v57, %v3856_v49  ;;  %v3971_v49 = vld [vmem:[%s4444_s12] ss:$0 sm:$0xff]  ;;  %v4058_v19 = vpop.permute.xlu0 %2160 }
 0x4ba   :  { %v3025_v14 = vpop.eup %3024  ;;  %vm2185_vm1 = vcmp.eq.s32.totalorder %v3966_v4, %v4058_v19 }
 0x4bb   :  { %2822 = vmatprep.mubr.bf16.mxu1 %v1681_v21  ;;  %v1630_v44 = vmul.f32 %v3025_v14, %v3861_v7  ;;  %v1651_v22 = vmul.f32 %v3911_v58, %v1629_v1 }
 0x4bd   :  { %v1652_v55 = vmul.f32 %v3911_v58, %v1630_v44  ;;  %v1673_v30 = vadd.f32 %v3918_v62, %v1651_v22 }
 0x4bf   :  { %v1674_v50 = vadd.f32 %v3918_v62, %v1652_v55 }
 0x4c1   :  { %v1682_v43 = vpack.c.bf16 %v1674_v50, %v1673_v30  ;;  %v2124_v50 = vld [vmem:[%s4434_s2 + $0x70] sm:$0xff] }
 0x4c3   :  { %2823 = vmatmul.mubr.bf16.gmra.mrb[68].mxu1 %v1682_v43  ;;  %v2125_v43 = vld [vmem:[%s4434_s2 + $0x78] sm:$0xff] }
 0x568   :  { %v2812_v29 = vpop.f32.mrb[64].mxu0 }
 0x569   :  { %v3975_v7 = vadd.f32 %v2812_v29, %v3971_v49  ;;  %v1788_v58 = vpop.f32.mrb[65].mxu0 }
 0x56a   :  { %v2813_v31 = vpop.f32.mrb[66].mxu0  ;;  %v3978_v62 = vadd.f32 %v3971_v49, %v1788_v58 }
 0x56b   :  { %v3981_v12 = vadd.f32 %v2813_v31, %v3971_v49  ;;  %v1791_v10 = vpop.f32.mrb[67].mxu0  ;;  %v3986_v32 = vsel %vm1933_vm0, %v3975_v7, -1e+30 }
 0x56c   :  { %v3989_v15 = vadd.f32 %v3971_v49, %v1791_v10  ;;  %1954 = vmax.xlane.f32.xlu0 %v3986_v32  ;;  %v4005_v25 = vsel %vm1933_vm0, %v3978_v62, -1e+30  ;;  %v2190_v10 = vsel %vm2174_vm3, %v3978_v62, 0.0 }
 0x56d   :  { %v2604_v35 = vpack.c.bf16 %v3981_v12, %v3975_v7  ;;  %v3997_v39 = vsel %vm1933_vm0, %v3981_v12, -1e+30 }
 0x56e   :  { %v2599_v46 = vpack.c.bf16 %v3989_v15, %v3978_v62  ;;  %1956 = vmax.xlane.f32.xlu1 %v3997_v39  ;;  %v4011_v23 = vsel %vm1933_vm0, %v3989_v15, -1e+30 }
 0x56f   :  { %2643 = vst [vmem:[#allocation8 + $0x8] sm:$0xff] %v2604_v35  }
 0x570   :  { %2600 = vst [vmem:[#allocation8] sm:$0xff] %v2599_v46   ;;  %1950 = vmax.xlane.f32.xlu0 %v4005_v25 }
 0x572   :  { %1952 = vmax.xlane.f32.xlu1 %v4011_v23 }
 0x576   :  { %v2816_v2 = vpop.f32.mrb[68].mxu0 }
 0x577   :  { %v4015_v18 = vadd.f32 %v2816_v2, %v3971_v49  ;;  %v1804_v42 = vpop.f32.mrb[69].mxu0  ;;  %v4159_v2 = vld [vmem:[%s4445_s13] ss:$0 sm:$0xff]  ;;  %s3216_s13 = smov [#allocation8]  }
 0x578   :  { %v2817_v26 = vpop.f32.mrb[70].mxu0  ;;  %v4018_v13 = vadd.f32 %v3971_v49, %v1804_v42  ;;  %v2245_v42 = vsel %vm2174_vm3, %v4159_v2, 0.0  ;;  %s2418_s25 = sshll.u32 %s3216_s13, 4  ;;  %s2419_s25 = int_to_ptr.vmem [resolvable:$true] %s2418_s25 }
 0x579   :  { %v4021_v41 = vadd.f32 %v2817_v26, %v3971_v49  ;;  %v1807_v52 = vpop.f32.mrb[71].mxu0  ;;  %v4026_v45 = vsel %vm1933_vm0, %v4015_v18, -1e+30  ;;  %s3156_s26 = scalar_lea.vmem %s2419_s25, 1024  ;;  %p3161_p11 = scmp.lt.s32.totalorder %s2419_s25, %s2419_s25 }
 0x57a   :  { %v4029_v60 = vadd.f32 %v3971_v49, %v1807_v52  ;;  %1962 = vmax.xlane.f32.xlu0 %v4026_v45  ;;  %v4047_v6 = vsel %vm1933_vm0, %v4018_v13, -1e+30  ;;  %p3157_p10 = scmp.ne.s32.totalorder %s2419_s25, %s3156_s26  ;;  %p3162_p12 = scmp.lt.s32.totalorder %s3156_s26, %s3156_s26 }
 0x57b   :  { %v2614_v27 = vpack.c.bf16 %v4021_v41, %v4015_v18  ;;  %v4039_v20 = vsel %vm1933_vm0, %v4021_v41, -1e+30 }
 0x57c   :  { %v2609_v40 = vpack.c.bf16 %v4029_v60, %v4018_v13  ;;  %1964 = vmax.xlane.f32.xlu1 %v4039_v20  ;;  %v4053_v54 = vsel %vm1933_vm0, %v4029_v60, -1e+30  ;;  %p3163_p13 = por %p3162_p12, %p3161_p11 }
 0x57d   :  { %2645 = vst [vmem:[#allocation8 + $0x18] sm:$0xff] %v2614_v27  }
 0x57e   :  { %2644 = vst [vmem:[#allocation8 + $0x10] sm:$0xff] %v2609_v40   ;;  %1958 = vmax.xlane.f32.xlu0 %v4047_v6  ;;  %p3164_p0 = pnand %p3163_p13, %p3157_p10 }
 0x580   :  { %1960 = vmax.xlane.f32.xlu1 %v4053_v54 }
 0x586   :  { %v2820_v48 = vpop.f32.mrb[64].mxu1 }
 0x587   :  { %v4061_v17 = vadd.f32 %v2820_v48, %v3971_v49  ;;  %v1820_v38 = vpop.f32.mrb[65].mxu1 }
 0x588   :  { %v2821_v28 = vpop.f32.mrb[66].mxu1  ;;  %v4066_v53 = vadd.f32 %v3971_v49, %v1820_v38 }
 0x589   :  { %v1832_v16 = vadd.f32 %v2821_v28, %v3971_v49  ;;  %v1823_v24 = vpop.f32.mrb[67].mxu1  ;;  %v4072_v3 = vsel %vm1933_vm0, %v4061_v17, -1e+30 }
 0x58a   :  { %v4075_v63 = vadd.f32 %v3971_v49, %v1823_v24  ;;  %1970 = vmax.xlane.f32.xlu0 %v4072_v3  ;;  %v4094_v9 = vsel %vm1933_vm0, %v4066_v53, -1e+30 }
 0x58b   :  { %v2624_v59 = vpack.c.bf16 %v1832_v16, %v4061_v17  ;;  %v4082_v47 = vsel %vm2185_vm1, %v1832_v16, 0.0  ;;  %v4086_v34 = vsel %vm1933_vm0, %v1832_v16, -1e+30 }
 0x58c   :  { %v2619_v8 = vpack.c.bf16 %v4075_v63, %v4066_v53  ;;  %1972 = vmax.xlane.f32.xlu1 %v4086_v34  ;;  %v4100_v0 = vsel %vm1933_vm0, %v4075_v63, -1e+30 }
 0x58d   :  { %2647 = vst [vmem:[#allocation8 + $0x28] sm:$0xff] %v2624_v59  }
 0x58e   :  { %2646 = vst [vmem:[#allocation8 + $0x20] sm:$0xff] %v2619_v8   ;;  %1966 = vmax.xlane.f32.xlu0 %v4094_v9  ;;  %v2199_v8 = vsel %vm2183_vm11, %v4075_v63, 0.0 }
 0x590   :  { %1968 = vmax.xlane.f32.xlu1 %v4100_v0 }
 0x596   :  { %v2824_v56 = vpop.f32.mrb[68].mxu1 }
 0x597   :  { %v4104_v36 = vadd.f32 %v2824_v56, %v3971_v49  ;;  %v1836_v11 = vpop.f32.mrb[69].mxu1 }
 0x598   :  { %v2825_v61 = vpop.f32.mrb[70].mxu1  ;;  %v4107_v51 = vadd.f32 %v3971_v49, %v1836_v11 }
 0x599   :  { %v4110_v33 = vadd.f32 %v2825_v61, %v3971_v49  ;;  %v1839_v57 = vpop.f32.mrb[71].mxu1  ;;  %v4115_v21 = vsel %vm1933_vm0, %v4104_v36, -1e+30 }
 0x59a   :  { %v4118_v1 = vadd.f32 %v3971_v49, %v1839_v57  ;;  %1978 = vmax.xlane.f32.xlu0 %v4115_v21  ;;  %v4134_v55 = vsel %vm1933_vm0, %v4107_v51, -1e+30  ;;  %v2131_v49 = vpop.permute.xlu1 %2130 }
 0x59b   :  { %v2634_v14 = vpack.c.bf16 %v4110_v33, %v4104_v36  ;;  %v4126_v44 = vsel %vm1933_vm0, %v4110_v33, -1e+30  ;;  %vm2175_vm2 = vcmp.eq.s32.totalorder %v3966_v4, %v2131_v49 }
 0x59c   :  { %v2629_v22 = vpack.c.bf16 %v4118_v1, %v4107_v51  ;;  %1980 = vmax.xlane.f32.xlu1 %v4126_v44  ;;  %v4140_v30 = vsel %vm1933_vm0, %v4118_v1, -1e+30  ;;  %v2191_v31 = vsel %vm2175_vm2, %v3989_v15, 0.0  ;;  %v2246_v15 = vsel %vm2175_vm2, %v4159_v2, 0.0 }
 0x59d   :  { %2649 = vst [vmem:[#allocation8 + $0x38] sm:$0xff] %v2634_v14  }
 0x59e   :  { %2648 = vst [vmem:[#allocation8 + $0x30] sm:$0xff] %v2629_v22   ;;  %1974 = vmax.xlane.f32.xlu0 %v4134_v55  ;;  %v2134_v29 = vpop.permute.xlu1 %2133 }
 0x59f   :  { %vm2176_vm4 = vcmp.eq.s32.totalorder %v3966_v4, %v2134_v29 }
 0x5a0   :  { %1976 = vmax.xlane.f32.xlu1 %v4140_v30  ;;  %v2192_v46 = vsel %vm2176_vm4, %v3975_v7, 0.0  ;;  %v2247_v62 = vsel %vm2176_vm4, %v4159_v2, 0.0 }
 0x5a2   :  { %v2137_v58 = vpop.permute.xlu1 %2136 }
 0x5a3   :  { %vm2177_vm5 = vcmp.eq.s32.totalorder %v3966_v4, %v2137_v58 }
 0x5a4   :  { %v2193_v7 = vsel %vm2177_vm5, %v3981_v12, 0.0  ;;  %v2248_v37 = vsel %vm2177_vm5, %v4159_v2, 0.0 }
 0x5a6   :  { %v2140_v35 = vpop.permute.xlu1 %2139 }
 0x5a7   :  { %vm2178_vm6 = vcmp.eq.s32.totalorder %v3966_v4, %v2140_v35 }
 0x5a8   :  { %v2194_v52 = vsel %vm2178_vm6, %v4018_v13, 0.0  ;;  %v2249_v40 = vsel %vm2178_vm6, %v4159_v2, 0.0 }
 0x5aa   :  { %v2143_v26 = vpop.permute.xlu1 %2142 }
 0x5ab   :  { %vm2179_vm7 = vcmp.eq.s32.totalorder %v3966_v4, %v2143_v26 }
 0x5ac   :  { %v2195_v48 = vsel %vm2179_vm7, %v4029_v60, 0.0  ;;  %v2250_v13 = vsel %vm2179_vm7, %v4159_v2, 0.0 }
 0x5ae   :  { %v2146_v27 = vpop.permute.xlu1 %2145 }
 0x5af   :  { %vm2180_vm8 = vcmp.eq.s32.totalorder %v3966_v4, %v2146_v27 }
 0x5b0   :  { %v2196_v12 = vsel %vm2180_vm8, %v4015_v18, 0.0  ;;  %v2251_v28 = vsel %vm2180_vm8, %v4159_v2, 0.0 }
 0x5b1   :  { %2169 = vperm.xlu1 %2857, %v2124_v50  }
 0x5b2   :  { %v2149_v38 = vpop.permute.xlu1 %2148 }
 0x5b3   :  { %vm2181_vm9 = vcmp.eq.s32.totalorder %v3966_v4, %v2149_v38 }
 0x5b4   :  { %2172 = vperm.xlu0 %2856, %v2125_v43   ;;  %v2197_v24 = vsel %vm2181_vm9, %v4021_v41, 0.0  ;;  %v2252_v18 = vsel %vm2181_vm9, %v4159_v2, 0.0  ;;  %v4191_v41 = vpop.permute.xlu0 %2166 }
 0x5b5   :  { %vm2187_vm14 = vcmp.eq.s32.totalorder %v3966_v4, %v4191_v41 }
 0x5b6   :  { %v2152_v16 = vpop.permute.xlu1 %2151  ;;  %v2258_v41 = vsel %vm2187_vm14, %v4159_v2, 0.0 }
 0x5b7   :  { %vm2182_vm10 = vcmp.eq.s32.totalorder %v3966_v4, %v2152_v16 }
 0x5b8   :  { %v2198_v60 = vsel %vm2182_vm10, %v4066_v53, 0.0  ;;  %v2253_v53 = vsel %vm2182_vm10, %v4159_v2, 0.0 }
 0x5ba   :  { %v4183_v59 = vpop.permute.xlu1 %2157 }
 0x5bb   :  { %vm2184_vm12 = vcmp.eq.s32.totalorder %v3966_v4, %v4183_v59 }
 0x5bc   :  { %v2200_v11 = vsel %vm2184_vm12, %v4061_v17, 0.0 }
 0x5be   :  { %v4194_v56 = vpop.permute.xlu1 %2163 }
 0x5bf   :  { %vm2186_vm13 = vcmp.eq.s32.totalorder %v3966_v4, %v4194_v56 }
 0x5c0   :  { %v2257_v59 = vsel %vm2186_vm13, %v4159_v2, 0.0 }
 0x5d3   :  { %2208 = vadd.xlane.f32.xlu0 %v2191_v31 }
 0x5d5   :  { %2206 = vadd.xlane.f32.xlu1 %v2190_v10 }
 0x5d7   :  { %2210 = vadd.xlane.f32.xlu0 %v2192_v46 }
 0x5d9   :  { %2261 = vadd.xlane.f32.xlu1 %v2245_v42 }
 0x5db   :  { %2263 = vadd.xlane.f32.xlu0 %v2246_v15 }
 0x5dd   :  { %2265 = vadd.xlane.f32.xlu1 %v2247_v62 }
 0x5df   :  { %2212 = vadd.xlane.f32.xlu0 %v2193_v7 }
 0x5e1   :  { %2214 = vadd.xlane.f32.xlu1 %v2194_v52 }
 0x5e3   :  { %2267 = vadd.xlane.f32.xlu0 %v2248_v37 }
 0x5e5   :  { %2269 = vadd.xlane.f32.xlu1 %v2249_v40 }
 0x5e7   :  { %2216 = vadd.xlane.f32.xlu0 %v2195_v48 }
 0x5e9   :  { %2218 = vadd.xlane.f32.xlu1 %v2196_v12 }
 0x5eb   :  { %2271 = vadd.xlane.f32.xlu0 %v2250_v13 }
 0x5ed   :  { %2273 = vadd.xlane.f32.xlu1 %v2251_v28 }
 0x5ef   :  { %2220 = vadd.xlane.f32.xlu0 %v2197_v24 }
 0x5f1   :  { %2222 = vadd.xlane.f32.xlu1 %v2198_v60 }
 0x5f3   :  { %2275 = vadd.xlane.f32.xlu0 %v2252_v18 }
 0x5f5   :  { %2224 = vadd.xlane.f32.xlu1 %v2199_v8 }
 0x5f7   :  { %2277 = vadd.xlane.f32.xlu0 %v2253_v53 }
 0x5f9   :  { %2226 = vadd.xlane.f32.xlu1 %v2200_v11  ;;  %v4200_v61 = vpop.xlane.xlu0 %1954 }
 0x5fa   :  { %v1984_v63 = vsub.f32 %v3986_v32, %v4200_v61 }
 0x5fb   :  { %v4204_v57 = vpop.xlane.xlu1 %1956 }
 0x5fc   :  { %v2002_v14 = vmul.f32 1.442695, %v1984_v63  ;;  %v1985_v50 = vsub.f32 %v3997_v39, %v4204_v57 }
 0x5fd   :  { %v4206_v22 = vpop.xlane.xlu0 %1950 }
 0x5fe   :  { %3026 = vpow2.f32 %v2002_v14  ;;  %v1982_v43 = vsub.f32 %v4005_v25, %v4206_v22  ;;  %v2004_v58 = vmul.f32 1.442695, %v1985_v50 }
 0x5ff   :  { %v4212_v49 = vpop.xlane.xlu1 %1952 }
 0x600   :  { %v1998_v17 = vmul.f32 1.442695, %v1982_v43  ;;  %v1983_v29 = vsub.f32 %v4011_v23, %v4212_v49 }
 0x602   :  { %3028 = vpow2.f32 %v1998_v17  ;;  %v2000_v32 = vmul.f32 1.442695, %v1983_v29 }
 0x604   :  { %3030 = vpow2.f32 %v2000_v32 }
 0x605   :  { %3032 = vpow2.f32 %v2004_v58 }
 0x607   :  { %v4216_v31 = vpop.xlane.xlu0 %1962 }
 0x608   :  { %v3027_v10 = vpop.eup %3026  ;;  %v1988_v39 = vsub.f32 %v4026_v45, %v4216_v31 }
 0x609   :  { %v4220_v35 = vpop.xlane.xlu1 %1964  ;;  %2034 = vadd.xlane.f32.xlu0 %v3027_v10 }
 0x60a   :  { %v2010_v25 = vmul.f32 1.442695, %v1988_v39  ;;  %v1989_v46 = vsub.f32 %v4039_v20, %v4220_v35 }
 0x60b   :  { %v4224_v42 = vpop.xlane.xlu0 %1958 }
 0x60c   :  { %v3029_v23 = vpop.eup %3028  ;;  %3034 = vpow2.f32 %v2010_v25  ;;  %v2012_v15 = vmul.f32 1.442695, %v1989_v46  ;;  %v1986_v62 = vsub.f32 %v4047_v6, %v4224_v42 }
 0x60d   :  { %v4228_v26 = vpop.xlane.xlu1 %1960  ;;  %2030 = vadd.xlane.f32.xlu1 %v3029_v23 }
 0x60e   :  { %v3031_v7 = vpop.eup %3030  ;;  %3036 = vpow2.f32 %v2012_v15  ;;  %v2006_v45 = vmul.f32 1.442695, %v1986_v62  ;;  %v1987_v52 = vsub.f32 %v4053_v54, %v4228_v26  ;;  %v2202_v15 = vsel %vm2186_vm13, %v4107_v51, 0.0 }
 0x60f   :  { %2032 = vadd.xlane.f32.xlu0 %v3031_v7  ;;  %v3033_v37 = vpop.eup %3032  ;;  %v2256_v62 = vsel %vm2185_vm1, %v4159_v2, 0.0  ;;  %vm2325_vm1 = vcmask 7168  }
 0x610   :  { %3038 = vpow2.f32 %v2006_v45  ;;  %v2008_v20 = vmul.f32 1.442695, %v1987_v52 }
 0x611   :  { %2036 = vadd.xlane.f32.xlu1 %v3033_v37 }
 0x612   :  { %3040 = vpow2.f32 %v2008_v20 }
 0x616   :  { %v3035_v27 = vpop.eup %3034 }
 0x617   :  { %2042 = vadd.xlane.f32.xlu0 %v3035_v27  ;;  %v4232_v40 = vpop.xlane.xlu0 %1970 }
 0x618   :  { %v3037_v6 = vpop.eup %3036  ;;  %v1992_v48 = vsub.f32 %v4072_v3, %v4232_v40  ;;  %v2254_v3 = vsel %vm2183_vm11, %v4159_v2, 0.0 }
 0x619   :  { %v4236_v38 = vpop.xlane.xlu1 %1972  ;;  %2044 = vadd.xlane.f32.xlu1 %v3037_v6 }
 0x61a   :  { %v3039_v12 = vpop.eup %3038  ;;  %v2018_v13 = vmul.f32 1.442695, %v1992_v48  ;;  %v1993_v16 = vsub.f32 %v4086_v34, %v4236_v38 }
 0x61b   :  { %2038 = vadd.xlane.f32.xlu0 %v3039_v12  ;;  %v4238_v54 = vpop.xlane.xlu0 %1966 }
 0x61c   :  { %v3041_v28 = vpop.eup %3040  ;;  %3042 = vpow2.f32 %v2018_v13  ;;  %v1990_v24 = vsub.f32 %v4094_v9, %v4238_v54  ;;  %v2020_v53 = vmul.f32 1.442695, %v1993_v16 }
 0x61d   :  { %v4244_v60 = vpop.xlane.xlu1 %1968  ;;  %2040 = vadd.xlane.f32.xlu1 %v3041_v28 }
 0x61e   :  { %v2014_v18 = vmul.f32 1.442695, %v1990_v24  ;;  %v1991_v8 = vsub.f32 %v4100_v0, %v4244_v60 }
 0x61f   :  { %2279 = vadd.xlane.f32.xlu0 %v2254_v3 }
 0x620   :  { %3044 = vpow2.f32 %v2014_v18  ;;  %v2016_v11 = vmul.f32 1.442695, %v1991_v8 }
 0x622   :  { %3046 = vpow2.f32 %v2016_v11 }
 0x623   :  { %3048 = vpow2.f32 %v2020_v53 }
 0x626   :  { %v3043_v34 = vpop.eup %3042 }
 0x627   :  { %2050 = vadd.xlane.f32.xlu1 %v3043_v34  ;;  %v4252_v9 = vpop.xlane.xlu0 %1978 }
 0x628   :  { %v1996_v63 = vsub.f32 %v4115_v21, %v4252_v9 }
 0x629   :  { %v4256_v14 = vpop.xlane.xlu1 %1980 }
 0x62a   :  { %v3045_v5 = vpop.eup %3044  ;;  %v2026_v50 = vmul.f32 1.442695, %v1996_v63  ;;  %v1997_v0 = vsub.f32 %v4126_v44, %v4256_v14 }
 0x62b   :  { %2046 = vadd.xlane.f32.xlu0 %v3045_v5  ;;  %v4260_v43 = vpop.xlane.xlu0 %1974 }
 0x62c   :  { %v3047_v17 = vpop.eup %3046  ;;  %3050 = vpow2.f32 %v2026_v50  ;;  %v2028_v29 = vmul.f32 1.442695, %v1997_v0  ;;  %v1994_v58 = vsub.f32 %v4134_v55, %v4260_v43 }
 0x62d   :  { %v4264_v32 = vpop.xlane.xlu1 %1976  ;;  %2048 = vadd.xlane.f32.xlu1 %v3047_v17  ;;  %v3049_v21 = vpop.eup %3048 }
 0x62e   :  { %3052 = vpow2.f32 %v2028_v29  ;;  %v2022_v10 = vmul.f32 1.442695, %v1994_v58  ;;  %v1995_v39 = vsub.f32 %v4140_v30, %v4264_v32  ;;  %v2255_v30 = vsel %vm2184_vm12, %v4159_v2, 0.0 }
 0x62f   :  { %2052 = vadd.xlane.f32.xlu0 %v3049_v21 }
 0x630   :  { %3054 = vpow2.f32 %v2022_v10  ;;  %v2024_v44 = vmul.f32 1.442695, %v1995_v39 }
 0x631   :  { %v2170_v56 = vpop.permute.xlu1 %2169 }
 0x632   :  { %3056 = vpow2.f32 %v2024_v44  ;;  %vm2188_vm15 = vcmp.eq.s32.totalorder %v3966_v4, %v2170_v56 }
 0x633   :  { %v2173_v7 = vpop.permute.xlu0 %2172  ;;  %v2204_v51 = vsel %vm2188_vm15, %v4104_v36, 0.0 }
 0x634   :  { %vm2189_vm0 = vcmp.eq.s32.totalorder %v3966_v4, %v2173_v7 }
 0x635   :  { %v2205_v19 = vsel %vm2189_vm0, %v4110_v33, 0.0  ;;  %v2260_v45 = vsel %vm2189_vm0, %v4159_v2, 0.0 }
 0x636   :  { %v3051_v25 = vpop.eup %3050 }
 0x637   :  { %2058 = vadd.xlane.f32.xlu1 %v3051_v25 }
 0x638   :  { %v3053_v46 = vpop.eup %3052 }
 0x639   :  { %2060 = vadd.xlane.f32.xlu0 %v3053_v46 }
 0x63a   :  { %v3055_v23 = vpop.eup %3054 }
 0x63b   :  { %2054 = vadd.xlane.f32.xlu1 %v3055_v23 }
 0x63c   :  { %v3057_v55 = vpop.eup %3056 }
 0x63d   :  { %2056 = vadd.xlane.f32.xlu0 %v3057_v55 }
 0x63f   :  { %2228 = vadd.xlane.f32.xlu1 %v4082_v47  ;;  %v2203_v47 = vsel %vm2187_vm14, %v4118_v1, 0.0  ;;  %v2259_v1 = vsel %vm2188_vm15, %v4159_v2, 0.0 }
 0x641   :  { %2281 = vadd.xlane.f32.xlu0 %v2255_v30 }
 0x643   :  { %2230 = vadd.xlane.f32.xlu1 %v2202_v15 }
 0x645   :  { %2283 = vadd.xlane.f32.xlu0 %v2256_v62 }
 0x647   :  { %2232 = vadd.xlane.f32.xlu1 %v2203_v47 }
 0x649   :  { %2285 = vadd.xlane.f32.xlu0 %v2257_v59 }
 0x64b   :  { %2234 = vadd.xlane.f32.xlu1 %v2204_v51 }
 0x64d   :  { %2287 = vadd.xlane.f32.xlu0 %v2258_v41 }
 0x64f   :  { %2236 = vadd.xlane.f32.xlu1 %v2205_v19 }
 0x651   :  { %2289 = vadd.xlane.f32.xlu0 %v2259_v1 }
 0x653   :  { %2291 = vadd.xlane.f32.xlu1 %v2260_v45 }
 0x660   :  { %v2209_v52 = vpop.xlane.xlu0 %2208 }
 0x662   :  { %v2207_v37 = vpop.xlane.xlu1 %2206 }
 0x664   :  { %v2211_v20 = vpop.xlane.xlu0 %2210 }
 0x666   :  { %v4291_v27 = vpop.xlane.xlu1 %2261 }
 0x668   :  { %v4293_v36 = vpop.xlane.xlu0 %2263 }
 0x66a   :  { %v4295_v6 = vpop.xlane.xlu1 %2265 }
 0x66c   :  { %v4297_v48 = vpop.xlane.xlu0 %2212 }
 0x66e   :  { %v4299_v12 = vpop.xlane.xlu1 %2214 }
 0x670   :  { %v4301_v33 = vpop.xlane.xlu0 %2267 }
 0x672   :  { %v4303_v13 = vpop.xlane.xlu1 %2269 }
 0x674   :  { %v4305_v28 = vpop.xlane.xlu0 %2216 }
 0x676   :  { %v4307_v2 = vpop.xlane.xlu1 %2218 }
 0x678   :  { %v4309_v16 = vpop.xlane.xlu0 %2271 }
 0x67a   :  { %v4311_v24 = vpop.xlane.xlu1 %2273 }
 0x67c   :  { %v4313_v3 = vpop.xlane.xlu0 %2220 }
 0x67e   :  { %v4315_v18 = vpop.xlane.xlu1 %2222 }
 0x680   :  { %v4317_v8 = vpop.xlane.xlu0 %2275 }
 0x682   :  { %v4319_v53 = vpop.xlane.xlu1 %2224 }
 0x684   :  { %v4321_v11 = vpop.xlane.xlu0 %2277 }
 0x686   :  { %v4323_v34 = vpop.xlane.xlu1 %2226 }
 0x696   :  { %v2035_v63 = vpop.xlane.xlu0 %2034 }
 0x69a   :  { %v2031_v5 = vpop.xlane.xlu1 %2030 }
 0x69b   :  { %3058 = vlog2.f32 %v2031_v5 }
 0x69c   :  { %v2033_v50 = vpop.xlane.xlu0 %2032 }
 0x69d   :  { %3060 = vlog2.f32 %v2033_v50 }
 0x69e   :  { %3062 = vlog2.f32 %v2035_v63  ;;  %v2037_v0 = vpop.xlane.xlu1 %2036 }
 0x69f   :  { %3064 = vlog2.f32 %v2037_v0 }
 0x6a4   :  { %v2043_v17 = vpop.xlane.xlu0 %2042 }
 0x6a5   :  { %v3059_v29 = vpop.eup %3058 }
 0x6a6   :  { %v2045_v58 = vpop.xlane.xlu1 %2044  ;;  %v2063_v39 = vmul.f32 0.6931472, %v3059_v29 }
 0x6a7   :  { %v3061_v21 = vpop.eup %3060 }
 0x6a8   :  { %v3063_v10 = vpop.eup %3062  ;;  %v2065_v44 = vmul.f32 0.6931472, %v3061_v21  ;;  %v2039_v25 = vpop.xlane.xlu0 %2038  ;;  %v2094_v30 = vadd.f32 %v2063_v39, %v4206_v22 }
 0x6a9   :  { %3066 = vlog2.f32 %v2039_v25  ;;  %v2067_v55 = vmul.f32 0.6931472, %v3063_v10  ;;  %v3065_v15 = vpop.eup %3064 }
 0x6aa   :  { %v2095_v46 = vadd.f32 %v2065_v44, %v4212_v49  ;;  %v2041_v23 = vpop.xlane.xlu1 %2040  ;;  %v2293_v47 = vsub.f32 %v2094_v30, %v2207_v37  ;;  %v2069_v59 = vmul.f32 0.6931472, %v3065_v15  ;;  %v2367_v44 = vsel %vm2325_vm1, %v4293_v36, 0.0 }
 0x6ab   :  { %3068 = vlog2.f32 %v2041_v23  ;;  %v2096_v56 = vadd.f32 %v2067_v55, %v4200_v61 }
 0x6ac   :  { %3070 = vlog2.f32 %v2043_v17  ;;  %v2294_v62 = vsub.f32 %v2095_v46, %v2209_v52  ;;  %v2309_v19 = vmul.f32 %v2293_v47, %v4291_v27  ;;  %v2097_v49 = vadd.f32 %v2069_v59, %v4204_v57  ;;  %v4331_v45 = vpop.xlane.xlu0 %2279 }
 0x6ad   :  { %3072 = vlog2.f32 %v2045_v58  ;;  %v2295_v41 = vsub.f32 %v2096_v56, %v2211_v20  ;;  %v2371_v47 = vsel %vm2325_vm1, %v4301_v33, 0.0 }
 0x6ae   :  { %v2310_v7 = vmul.f32 %v2294_v62, %v4293_v36  ;;  %v2326_v20 = vsel %vm2325_vm1, %v2309_v19, 0.0  ;;  %v2296_v0 = vsub.f32 %v2097_v49, %v4297_v48 }
 0x6af   :  { %v2311_v50 = vmul.f32 %v2295_v41, %v4295_v6 }
 0x6b0   :  { %v2327_v52 = vsel %vm2325_vm1, %v2310_v7, 0.0 }
 0x6b1   :  { %v2328_v58 = vadd.f32 %v2327_v52, %v2326_v20  ;;  %v2329_v48 = vsel %vm2325_vm1, %v2311_v50, 0.0  ;;  %v2373_v52 = vsel %vm2325_vm1, %v4303_v13, 0.0 }
 0x6b3   :  { %v3067_v51 = vpop.eup %3066  ;;  %v2330_v23 = vadd.f32 %v2329_v48, %v2328_v58 }
 0x6b4   :  { %v2071_v1 = vmul.f32 0.6931472, %v3067_v51  ;;  %v2051_v5 = vpop.xlane.xlu1 %2050 }
 0x6b5   :  { %v3069_v22 = vpop.eup %3068 }
 0x6b6   :  { %v3071_v63 = vpop.eup %3070  ;;  %v2098_v61 = vadd.f32 %v2071_v1, %v4224_v42  ;;  %v2073_v37 = vmul.f32 0.6931472, %v3069_v22  ;;  %v2366_v42 = vsel %vm2325_vm1, %v4291_v27, 0.0  ;;  %v2369_v27 = vsel %vm2325_vm1, %v4295_v6, 0.0 }
 0x6b7   :  { %v2075_v21 = vmul.f32 0.6931472, %v3071_v63  ;;  %v3073_v10 = vpop.eup %3072  ;;  %v2368_v15 = vadd.f32 %v2367_v44, %v2366_v42 }
 0x6b8   :  { %v2297_v57 = vsub.f32 %v2098_v61, %v4299_v12  ;;  %v2099_v17 = vadd.f32 %v2073_v37, %v4228_v26  ;;  %v2047_v29 = vpop.xlane.xlu0 %2046  ;;  %v2312_v12 = vmul.f32 %v2296_v0, %v4301_v33  ;;  %v2077_v30 = vmul.f32 0.6931472, %v3073_v10 }
 0x6b9   :  { %3074 = vlog2.f32 %v2047_v29  ;;  %v2100_v55 = vadd.f32 %v2075_v21, %v4216_v31  ;;  %v2370_v7 = vadd.f32 %v2369_v27, %v2368_v15 }
 0x6ba   :  { %3076 = vlog2.f32 %v2051_v5  ;;  %v2049_v39 = vpop.xlane.xlu1 %2048  ;;  %v2313_v26 = vmul.f32 %v2297_v57, %v4303_v13  ;;  %v2298_v25 = vsub.f32 %v2099_v17, %v4305_v28  ;;  %v2331_v36 = vsel %vm2325_vm1, %v2312_v12, 0.0 }
 0x6bb   :  { %3078 = vlog2.f32 %v2049_v39  ;;  %v2332_v28 = vadd.f32 %v2331_v36, %v2330_v23  ;;  %v2299_v59 = vsub.f32 %v2100_v55, %v4307_v2  ;;  %v2101_v31 = vadd.f32 %v2077_v30, %v4220_v35 }
 0x6bc   :  { %v2053_v46 = vpop.xlane.xlu0 %2052  ;;  %v2333_v62 = vsel %vm2325_vm1, %v2313_v26, 0.0  ;;  %v2314_v56 = vmul.f32 %v2298_v25, %v4309_v16  ;;  %v2372_v49 = vadd.f32 %v2371_v47, %v2370_v7  ;;  %v2375_v13 = vsel %vm2325_vm1, %v4309_v16, 0.0 }
 0x6bd   :  { %3080 = vlog2.f32 %v2053_v46  ;;  %v2334_v41 = vadd.f32 %v2333_v62, %v2332_v28  ;;  %v2315_v33 = vmul.f32 %v2299_v59, %v4311_v24  ;;  %v2300_v61 = vsub.f32 %v2101_v31, %v4313_v3 }
 0x6be   :  { %v2335_v6 = vsel %vm2325_vm1, %v2314_v56, 0.0  ;;  %v2374_v20 = vadd.f32 %v2373_v52, %v2372_v49  ;;  %v2377_v16 = vsel %vm2325_vm1, %v4311_v24, 0.0  ;;  %v2379_v46 = vsel %vm2325_vm1, %v4317_v8, 0.0 }
 0x6bf   :  { %v2336_v50 = vadd.f32 %v2335_v6, %v2334_v41  ;;  %v2337_v58 = vsel %vm2325_vm1, %v2315_v33, 0.0  ;;  %v2316_v3 = vmul.f32 %v2300_v61, %v4317_v8  ;;  %v2381_v24 = vsel %vm2325_vm1, %v4321_v11, 0.0 }
 0x6c0   :  { %v2376_v42 = vadd.f32 %v2375_v13, %v2374_v20  ;;  %v2383_v28 = vsel %vm2325_vm1, %v4331_v45, 0.0 }
 0x6c1   :  { %v2339_v48 = vsel %vm2325_vm1, %v2316_v3, 0.0 }
 0x6c2   :  { %v2378_v55 = vadd.f32 %v2377_v16, %v2376_v42 }
 0x6c3   :  { %v3075_v51 = vpop.eup %3074 }
 0x6c4   :  { %v3077_v19 = vpop.eup %3076  ;;  %v2079_v1 = vmul.f32 0.6931472, %v3075_v51  ;;  %v2059_v22 = vpop.xlane.xlu1 %2058  ;;  %v2380_v27 = vadd.f32 %v2379_v46, %v2378_v55 }
 0x6c5   :  { %v3079_v63 = vpop.eup %3078  ;;  %v2083_v0 = vmul.f32 0.6931472, %v3077_v19 }
 0x6c6   :  { %v2102_v2 = vadd.f32 %v2079_v1, %v4238_v54  ;;  %v2081_v35 = vmul.f32 0.6931472, %v3079_v63  ;;  %v2061_v37 = vpop.xlane.xlu0 %2060  ;;  %v2382_v59 = vadd.f32 %v2381_v24, %v2380_v27 }
 0x6c7   :  { %v3081_v5 = vpop.eup %3080 }
 0x6c8   :  { %v2301_v57 = vsub.f32 %v2102_v2, %v4315_v18  ;;  %v2103_v17 = vadd.f32 %v2081_v35, %v4244_v60  ;;  %v2055_v29 = vpop.xlane.xlu1 %2054  ;;  %v2085_v10 = vmul.f32 0.6931472, %v3081_v5  ;;  %v2338_v18 = vadd.f32 %v2337_v58, %v2336_v50 }
 0x6c9   :  { %3082 = vlog2.f32 %v2055_v29  ;;  %v2104_v60 = vadd.f32 %v2083_v0, %v4232_v40  ;;  %v2384_v49 = vadd.f32 %v2383_v28, %v2382_v59 }
 0x6ca   :  { %v2317_v54 = vmul.f32 %v2301_v57, %v4321_v11  ;;  %v2302_v21 = vsub.f32 %v2103_v17, %v4319_v53  ;;  %3084 = vlog2.f32 %v2059_v22  ;;  %v2057_v39 = vpop.xlane.xlu0 %2056  ;;  %v2105_v26 = vadd.f32 %v2085_v10, %v4236_v38 }
 0x6cb   :  { %3086 = vlog2.f32 %v2057_v39  ;;  %v2340_v23 = vadd.f32 %v2339_v48, %v2338_v18  ;;  %v2303_v40 = vsub.f32 %v2104_v60, %v4323_v34 }
 0x6cc   :  { %3088 = vlog2.f32 %v2061_v37  ;;  %v2229_v44 = vpop.xlane.xlu1 %2228  ;;  %v2318_v12 = vmul.f32 %v2302_v21, %v4331_v45  ;;  %v2341_v53 = vsel %vm2325_vm1, %v2317_v54, 0.0 }
 0x6cd   :  { %v2342_v15 = vadd.f32 %v2341_v53, %v2340_v23  ;;  %v2304_v36 = vsub.f32 %v2105_v26, %v2229_v44 }
 0x6ce   :  { %v2282_v25 = vpop.xlane.xlu0 %2281  ;;  %v2343_v62 = vsel %vm2325_vm1, %v2318_v12, 0.0 }
 0x6cf   :  { %v2319_v38 = vmul.f32 %v2303_v40, %v2282_v25  ;;  %v2344_v41 = vadd.f32 %v2343_v62, %v2342_v15  ;;  %v2385_v11 = vsel %vm2325_vm1, %v2282_v25, 0.0 }
 0x6d0   :  { %v2231_v30 = vpop.xlane.xlu1 %2230  ;;  %v2386_v33 = vadd.f32 %v2385_v11, %v2384_v49 }
 0x6d1   :  { %v2345_v1 = vsel %vm2325_vm1, %v2319_v38, 0.0 }
 0x6d2   :  { %v2284_v56 = vpop.xlane.xlu0 %2283  ;;  %v2346_v50 = vadd.f32 %v2345_v1, %v2344_v41 }
 0x6d3   :  { %v3083_v47 = vpop.eup %3082  ;;  %v2320_v7 = vmul.f32 %v2304_v36, %v2284_v56  ;;  %v2387_v45 = vsel %vm2325_vm1, %v2284_v56, 0.0 }
 0x6d4   :  { %v3085_v8 = vpop.eup %3084  ;;  %v2087_v31 = vmul.f32 0.6931472, %v3083_v47  ;;  %v2233_v34 = vpop.xlane.xlu1 %2232  ;;  %v2388_v0 = vadd.f32 %v2387_v45, %v2386_v33 }
 0x6d5   :  { %v3087_v51 = vpop.eup %3086  ;;  %v2091_v52 = vmul.f32 0.6931472, %v3085_v8  ;;  %v2347_v2 = vsel %vm2325_vm1, %v2320_v7, 0.0 }
 0x6d6   :  { %v3089_v19 = vpop.eup %3088  ;;  %v2089_v6 = vmul.f32 0.6931472, %v3087_v51  ;;  %v2106_v22 = vadd.f32 %v2087_v31, %v4260_v43  ;;  %v2286_v63 = vpop.xlane.xlu0 %2285  ;;  %v2348_v43 = vadd.f32 %v2347_v2, %v2346_v50 }
 0x6d7   :  { %v2093_v5 = vmul.f32 0.6931472, %v3089_v19  ;;  %v2389_v20 = vsel %vm2325_vm1, %v2286_v63, 0.0  ;;  %v2108_v13 = vadd.f32 %v2091_v52, %v4252_v9 }
 0x6d8   :  { %v2305_v61 = vsub.f32 %v2106_v22, %v2231_v30  ;;  %v2107_v35 = vadd.f32 %v2089_v6, %v4264_v32  ;;  %v2235_v37 = vpop.xlane.xlu1 %2234  ;;  %v2390_v54 = vadd.f32 %v2389_v20, %v2388_v0 }
 0x6d9   :  { %v2307_v39 = vsub.f32 %v2108_v13, %v2235_v37  ;;  %v2109_v18 = vadd.f32 %v2093_v5, %v4256_v14 }
 0x6da   :  { %v2306_v57 = vsub.f32 %v2107_v35, %v2233_v34  ;;  %v2321_v17 = vmul.f32 %v2305_v61, %v2286_v63  ;;  %v2288_v29 = vpop.xlane.xlu0 %2287 }
 0x6db   :  { %v2391_v58 = vsel %vm2325_vm1, %v2288_v29, 0.0 }
 0x6dc   :  { %v2349_v3 = vsel %vm2325_vm1, %v2321_v17, 0.0  ;;  %v2322_v21 = vmul.f32 %v2306_v57, %v2288_v29  ;;  %v2237_v10 = vpop.xlane.xlu1 %2236  ;;  %v2392_v60 = vadd.f32 %v2391_v58, %v2390_v54 }
 0x6dd   :  { %v2350_v32 = vadd.f32 %v2349_v3, %v2348_v43  ;;  %v2308_v48 = vsub.f32 %v2109_v18, %v2237_v10 }
 0x6de   :  { %v2351_v42 = vsel %vm2325_vm1, %v2322_v21, 0.0  ;;  %v2290_v44 = vpop.xlane.xlu0 %2289 }
 0x6df   :  { %v2352_v16 = vadd.f32 %v2351_v42, %v2350_v32  ;;  %v2323_v12 = vmul.f32 %v2307_v39, %v2290_v44  ;;  %v2393_v9 = vsel %vm2325_vm1, %v2290_v44, 0.0 }
 0x6e0   :  { %v2394_v26 = vadd.f32 %v2393_v9, %v2392_v60  ;;  %v2292_v53 = vpop.xlane.xlu1 %2291 }
 0x6e1   :  { %v2353_v25 = vsel %vm2325_vm1, %v2323_v12, 0.0  ;;  %v2324_v46 = vmul.f32 %v2308_v48, %v2292_v53  ;;  %v2395_v23 = vsel %vm2325_vm1, %v2292_v53, 0.0 }
 0x6e2   :  { %v2354_v55 = vadd.f32 %v2353_v25, %v2352_v16  ;;  %v2396_v40 = vadd.f32 %v2395_v23, %v2394_v26 }
 0x6e3   :  { %v2355_v14 = vsel %vm2325_vm1, %v2324_v46, 0.0 }
 0x6e4   :  { %2397 = vadd.xlane.f32.xlu1 %v2396_v40  ;;  %v2356_v30 = vadd.f32 %v2355_v14, %v2354_v55 }
 0x6e6   :  { %2357 = vadd.xlane.f32.xlu0 %v2356_v30 }
 0x6e7   :  { %3167 = shalt.err (!%p3164_p0)
}
 0x6e8   :  { %s3168_s5 = scalar_lea.hbm %s4446_s14, 1024 }
 0x6e9   :  { %p3169_p1 = scmp.ne.s32.totalorder %s4446_s14, %s3168_s5  ;;  %p3172_p2 = scmp.lt.u32.totalorder %s3168_s5, %s4446_s14 }
 0x6eb   :  { %p3174_p3 = pnand %p3172_p2, %p3169_p1 }
 0x6ed   :  { %3177 = shalt.err (!%p3174_p3)
}
 0x6ee   :  { %2424 = dma.vmem_to_hbm [thread:$0]  %s2419_s25, 1024, %s4446_s14, [#allocation4], %s4450_s3, %s4450_s3, %s3210_s29   ;;  %vm2407_vm2 = vcmp.eq.s32.totalorder %v3966_v4, 1  ;;  %vm2406_vm3 = vcmp.eq.s32.totalorder %v3966_v4, 0 }
 0x6ef   :  { %s3217_s14 = smov [#allocation9]  }
 0x6f0   :  { %s2431_s29 = sshll.u32 %s3217_s14, 4  ;;  %s2432_s29 = int_to_ptr.vmem [resolvable:$true] %s2431_s29 }
 0x6f1   :  { %s3178_s30 = scalar_lea.vmem %s2432_s29, 128  ;;  %p3183_p5 = scmp.lt.s32.totalorder %s2432_s29, %s2432_s29 }
 0x6f2   :  { %p3179_p4 = scmp.ne.s32.totalorder %s2432_s29, %s3178_s30  ;;  %p3184_p6 = scmp.lt.s32.totalorder %s3178_s30, %s3178_s30 }
 0x6f4   :  { %p3185_p7 = por %p3184_p6, %p3183_p5 }
 0x6f6   :  { %p3186_p8 = pnand %p3185_p7, %p3179_p4 }
 0x771   :  { %v2398_v24 = vpop.xlane.xlu1 %2397 }
 0x772   :  { %v2399_v15 = vrot.slane %v2398_v24, 4 }
 0x773   :  { %v2358_v27 = vpop.xlane.xlu0 %2357 }
 0x774   :  { %v2400_v36 = vadd.f32 %v2399_v15, %v2398_v24  ;;  %v2359_v62 = vrot.slane %v2358_v27, 4 }
 0x776   :  { %v2401_v38 = vrot.slane %v2400_v36, 2  ;;  %v2360_v56 = vadd.f32 %v2359_v62, %v2358_v27 }
 0x778   :  { %v2402_v47 = vadd.f32 %v2401_v38, %v2400_v36  ;;  %v2361_v28 = vrot.slane %v2360_v56, 2 }
 0x77a   :  { %v2362_v8 = vadd.f32 %v2361_v28, %v2360_v56  ;;  %v2403_v59 = vrot.slane %v2402_v47, 1 }
 0x77c   :  { %v2363_v31 = vrot.slane %v2362_v8, 1  ;;  %v2404_v34 = vadd.f32 %v2403_v59, %v2402_v47 }
 0x77e   :  { %v2364_v7 = vadd.f32 %v2363_v31, %v2362_v8 }
 0x780   :  { %2842 = vpush %v2364_v7 }
 0x781   :  { %2844 = vpush %v2404_v34 }
 0x7b1   :  { %s2843_s19 = spop %2842 }
 0x7b2   :  { %v2410_v51 = vstv %s2843_s19  ;;  %s2845_s3 = spop %2844 }
 0x7b3   :  { %v2408_v41 = vstv %s2845_s3 }
 0x7b4   :  { %v2409_v11 = vsel %vm2407_vm2, %v2408_v41, 0.0 }
 0x7b5   :  { %v2411_v19 = vsel %vm2406_vm3, %v2410_v51, %v2409_v11 }
 0x7b6   :  { %2412 = vst [vmem:[#allocation9] sm:$0xff] %v2411_v19 }
 0x7b7   :  { %3189 = shalt.err (!%p3186_p8)
}
 0x7b8   :  { %s3190_s20 = scalar_lea.hbm %s4447_s15, 128 }
 0x7b9   :  { %p3191_p9 = scmp.ne.s32.totalorder %s4447_s15, %s3190_s20  ;;  %p3194_p10 = scmp.lt.u32.totalorder %s3190_s20, %s4447_s15 }
 0x7bb   :  { %p3196_p11 = pnand %p3194_p10, %p3191_p9 }
 0x7bd   :  { %3199 = shalt.err (!%p3196_p11)
}
 0x7be   :  { %2434 = dma.vmem_to_hbm [thread:$0]  %s2432_s29, 128, %s4447_s15, [#allocation10]  }
 0x7bf   :  { %3204 = dma.done.wait [#allocation4], 1024  }
 0x7c0   :  { %3205 = vsyncadd [#allocation4], 4294966272 }
 0x7c1   :  { %3206 = dma.done.wait [#allocation10], 128  }
 0x7c2   :  { %3207 = vsyncadd [#allocation10], 4294967168 }
 0x7c3   :  { %2441 = vsyncpa [#allocation3], 1 }
 0x7c4   :  { %2442 = vsyncpa [#allocation6], 1 }
 0x7c5   :  { %2443 = vsyncpa [#allocation4], 1 }
 0x7c6   :  { %2444 = vsyncpa [#allocation10], 1 }

</bundles_post_ra>
